<compile_context>
chip_gen: v5e
topology: v5e:2x2
jax: 0.10.0
libtpu: 0.0.40
codegen_flags: <defaults>
</compile_context>

<pallas_src>
import functools

import jax
import jax.numpy as jnp
from jax import lax
from jax.experimental import pallas as pl
from jax.experimental.pallas import tpu as pltpu


def _fused_block_kernel(x_ref, dw1_ref, bd1_ref, b1_ref,
                        dw2_ref, bd2_ref, b2_ref, o_ref,
                        *, Nb, H, W, C_in, C_out, K, pad):
    """Fully fused Block forward for `Nb` batch elements (lane-dense layout).

    Block shapes:
      x_ref  : (Nb, H, W*C_in)     unpadded input, (w, c) flattened onto lanes
      dw1_ref: (K*K, W*C_in)       stage-1 depthwise weights, W-tiled
      bd1_ref: (W*C_in, W*C_out)   kron(I_W, pw1*scale1)
      b1_ref : (1, W*C_out)        folded bias (db1@pw1f + pb1*s1 + sh1), W-tiled
      dw2_ref: (K*K, W*C_out)      stage-2 depthwise weights, W-tiled
      bd2_ref: (W*C_out, W*C_out)  kron(I_W, pw2*scale2)
      b2_ref : (1, W*C_out)        folded bias, W-tiled
      o_ref  : (Nb, H, W*C_out)    lane-dense output (W*C_out multiple of 128)
    """
    WC_in = W * C_in
    WC_out = W * C_out

    def dw_taps(t_in, dw_ref, C, WC):
        """KxK depthwise conv for one element in the lane-dense (H, W*C) layout.
        Halo handled with XLU rolls + iota masks (no padded buffer)."""
        row = lax.broadcasted_iota(jnp.int32, (H, WC), 0)
        col = lax.broadcasted_iota(jnp.int32, (H, WC), 1)
        acc = jnp.zeros((H, WC), jnp.float32)
        for dy in range(K):
            oy = dy - pad                     # row offset of this tap
            for dx in range(K):
                ox = dx - pad                 # column (w) offset of this tap
                t = t_in
                if oy != 0:
                    t = pltpu.roll(t, shift=(-oy) % H, axis=0)
                    rmask = (row >= -oy) if oy < 0 else (row < H - oy)
                    t = jnp.where(rmask, t, 0.0)
                if ox != 0:
                    t = pltpu.roll(t, shift=(-ox * C) % WC, axis=1)
                    cmask = (col >= -ox * C) if ox < 0 else (col < WC - ox * C)
                    t = jnp.where(cmask, t, 0.0)
                acc = acc + t * dw_ref[dy * K + dx, :].reshape(1, WC)
        return acc

    # ---- stage 1: per-element depthwise taps, one stacked pointwise matmul --
    acc1 = jnp.concatenate(
        [dw_taps(x_ref[e], dw1_ref, C_in, WC_in) for e in range(Nb)], axis=0)
    y1 = jnp.dot(acc1.astype(bd1_ref.dtype), bd1_ref[...],
                 preferred_element_type=jnp.float32)
    y1 = jnp.maximum(y1 + b1_ref[...], 0.0)            # (Nb*H, W*C_out)

    # ---- stage 2: taps on the vreg-resident y1, one stacked matmul ----------
    acc2 = jnp.concatenate(
        [dw_taps(y1[e * H:(e + 1) * H, :], dw2_ref, C_out, WC_out)
         for e in range(Nb)], axis=0)
    y2 = jnp.dot(acc2.astype(bd2_ref.dtype), bd2_ref[...],
                 preferred_element_type=jnp.float32)
    y2 = jnp.maximum(y2 + b2_ref[...], 0.0)            # (Nb*H, W*C_out)

    o_ref[...] = y2.reshape(Nb, H, WC_out).astype(o_ref.dtype)

    # TODO(synk): activation=True branch (LeakyReLU + Dropout(0.65)) not
    # implemented; the default Block construction uses activation=False.


def fold_bn(gamma, beta, mean, var, eps=1e-5):
    scale = gamma / jnp.sqrt(var + eps)
    shift = beta - mean * scale
    return scale, shift


def prepare_block_params(p, W, *, matmul_dtype=jnp.float32):
    """Fold BN (inference) + conv biases into the pointwise weights and
    pre-tile everything into the lane-dense layouts the kernel consumes.
    In a real model this runs once at parameter-load time."""
    K = p["dw1"].shape[0]
    C_in = p["pw1"].shape[0]
    C_out = p["pw1"].shape[1]
    eye = jnp.eye(W, dtype=jnp.float32)

    pw1f = p["pw1"] * p["scale1"][None, :]                        # (C_in, C_out)
    b1f = p["db1"] @ pw1f + p["pb1"] * p["scale1"] + p["shift1"]  # (C_out,)
    pw2f = p["pw2"] * p["scale2"][None, :]                        # (C_out, C_out)
    b2f = p["db2"] @ pw2f + p["pb2"] * p["scale2"] + p["shift2"]  # (C_out,)

    return dict(
        dw1t=jnp.tile(p["dw1"].reshape(K * K, C_in), (1, W)),     # (K*K, W*C_in)
        bd1=jnp.kron(eye, pw1f).astype(matmul_dtype),             # (W*C_in, W*C_out)
        b1t=jnp.tile(b1f, W).reshape(1, W * C_out),               # (1, W*C_out)
        dw2t=jnp.tile(p["dw2"].reshape(K * K, C_out), (1, W)),    # (K*K, W*C_out)
        bd2=jnp.kron(eye, pw2f).astype(matmul_dtype),             # (W*C_out, W*C_out)
        b2t=jnp.tile(b2f, W).reshape(1, W * C_out),               # (1, W*C_out)
    )


def block_forward_nhwc(x_nhwc, p, *, K=3, pad=1, nb=None,
                       matmul_dtype=jnp.float32):
    """Block forward on lane-dense NHWC activations: (N,H,W,C_in)->(N,H,W,C_out).
    Use this entry point when chaining Blocks so the NCHW transposes are only
    paid once at the model boundary."""
    N, H, W, C_in = x_nhwc.shape
    C_out = p["pw1"].shape[1]

    # Fail loudly if the hand-tuned lane-dense layout no longer applies.
    assert (W * C_out) % 128 == 0, (
        f"lane-dense layout needs W*C_out to be a multiple of 128, got {W*C_out}")
    kron_bytes = ((W * C_in) * (W * C_out) + (W * C_out) ** 2) * \
        jnp.dtype(matmul_dtype).itemsize
    assert kron_bytes <= 8 * 1024 * 1024, (
        "kron(I_W, pw) weights too large for VMEM (v7x has 64 MiB); switch to a "
        "per-group matmul formulation")

    if nb is None:
        nb = N        # whole batch in one grid step (best on 1-TC v5e/v6e);
                      # pass nb=N//2 on v7x so both TensorCores get work.
    assert N % nb == 0, (N, nb)

    fp = prepare_block_params(p, W, matmul_dtype=matmul_dtype)

    x = x_nhwc.reshape(N, H, W * C_in)      # free row-major (W,C)->lane flatten

    kernel = functools.partial(_fused_block_kernel, Nb=nb, H=H, W=W,
                               C_in=C_in, C_out=C_out, K=K, pad=pad)

    out = pl.pallas_call(
        kernel,
        out_shape=jax.ShapeDtypeStruct((N, H, W * C_out), jnp.float32),
        grid_spec=pltpu.PrefetchScalarGridSpec(
            num_scalar_prefetch=0,
            grid=(N // nb,),
            in_specs=[
                pl.BlockSpec((nb, H, W * C_in), lambda b: (b, 0, 0)),
                pl.BlockSpec((K * K, W * C_in), lambda b: (0, 0)),
                pl.BlockSpec((W * C_in, W * C_out), lambda b: (0, 0)),
                pl.BlockSpec((1, W * C_out), lambda b: (0, 0)),
                pl.BlockSpec((K * K, W * C_out), lambda b: (0, 0)),
                pl.BlockSpec((W * C_out, W * C_out), lambda b: (0, 0)),
                pl.BlockSpec((1, W * C_out), lambda b: (0, 0)),
            ],
            out_specs=pl.BlockSpec((nb, H, W * C_out), lambda b: (b, 0, 0)),
        ),
        compiler_params=pltpu.CompilerParams(
            dimension_semantics=("parallel",)),
    )(x, fp["dw1t"], fp["bd1"], fp["b1t"], fp["dw2t"], fp["bd2"], fp["b2t"])

    return out.reshape(N, H, W, C_out)


def block_forward(x_nchw, p, *, K=3, pad=1, nb=None, matmul_dtype=jnp.float32):
    """PyTorch-style NCHW interface (transposes only at the Block boundary)."""
    x_nhwc = jnp.transpose(x_nchw, (0, 2, 3, 1))
    y = block_forward_nhwc(x_nhwc, p, K=K, pad=pad, nb=nb,
                           matmul_dtype=matmul_dtype)
    return jnp.transpose(y, (0, 3, 1, 2))


# ----------------------- pure-JAX reference (for checking) ------------------
def _ref_stage(x_nhwc, dw, db, pw, pb, scale, shift):
    C_in = x_nhwc.shape[-1]
    k = dw[:, :, None, :]  # HWIO with I=1 (depthwise)
    y = lax.conv_general_dilated(
        x_nhwc, k, window_strides=(1, 1), padding="SAME",
        dimension_numbers=("NHWC", "HWIO", "NHWC"),
        feature_group_count=C_in)
    y = y + db
    y = jnp.einsum("nhwc,cd->nhwd", y, pw) + pb
    y = y * scale + shift
    return jnp.maximum(y, 0.0)


def block_forward_ref(x_nchw, p):
    x = jnp.transpose(x_nchw, (0, 2, 3, 1))
    y = _ref_stage(x, p["dw1"], p["db1"], p["pw1"], p["pb1"],
                   p["scale1"], p["shift1"])
    y = _ref_stage(y, p["dw2"], p["db2"], p["pw2"], p["pb2"],
                   p["scale2"], p["shift2"])
    return jnp.transpose(y, (0, 3, 1, 2))


# ---------------------------------- main ------------------------------------
if __name__ == "__main__":
    key = jax.random.PRNGKey(0)
    N, C_IN, C_OUT, H, W, K = 2, 4, 8, 16, 16, 3

    ks = jax.random.split(key, 16)
    # Stage 1 params (depthwise 3x3 over C_IN, pointwise C_IN->C_OUT)
    dw1 = 0.2 * jax.random.normal(ks[0], (K, K, C_IN), jnp.float32)
    db1 = 0.1 * jax.random.normal(ks[1], (C_IN,), jnp.float32)
    pw1 = 0.2 * jax.random.normal(ks[2], (C_IN, C_OUT), jnp.float32)
    pb1 = 0.1 * jax.random.normal(ks[3], (C_OUT,), jnp.float32)
    g1 = 1.0 + 0.1 * jax.random.normal(ks[4], (C_OUT,), jnp.float32)
    b1 = 0.1 * jax.random.normal(ks[5], (C_OUT,), jnp.float32)
    m1 = 0.1 * jax.random.normal(ks[6], (C_OUT,), jnp.float32)
    v1 = jnp.abs(1.0 + 0.1 * jax.random.normal(ks[7], (C_OUT,), jnp.float32))
    scale1, shift1 = fold_bn(g1, b1, m1, v1)

    # Stage 2 params (depthwise 3x3 over C_OUT, pointwise C_OUT->C_OUT)
    dw2 = 0.2 * jax.random.normal(ks[8], (K, K, C_OUT), jnp.float32)
    db2 = 0.1 * jax.random.normal(ks[9], (C_OUT,), jnp.float32)
    pw2 = 0.2 * jax.random.normal(ks[10], (C_OUT, C_OUT), jnp.float32)
    pb2 = 0.1 * jax.random.normal(ks[11], (C_OUT,), jnp.float32)
    g2 = 1.0 + 0.1 * jax.random.normal(ks[12], (C_OUT,), jnp.float32)
    b2 = 0.1 * jax.random.normal(ks[13], (C_OUT,), jnp.float32)
    m2 = 0.1 * jax.random.normal(ks[14], (C_OUT,), jnp.float32)
    v2 = jnp.abs(1.0 + 0.1 * jax.random.normal(ks[15], (C_OUT,), jnp.float32))
    scale2, shift2 = fold_bn(g2, b2, m2, v2)

    params = dict(dw1=dw1, db1=db1, pw1=pw1, pb1=pb1, scale1=scale1, shift1=shift1,
                  dw2=dw2, db2=db2, pw2=pw2, pb2=pb2, scale2=scale2, shift2=shift2)

    x = jax.random.normal(jax.random.PRNGKey(1), (N, C_IN, H, W), jnp.float32)

    # Default: whole batch in one grid step, f32 matmuls (use
    # matmul_dtype=jnp.bfloat16 on v6e/v7x with a looser tolerance ~1e-3).
    out = jax.block_until_ready(block_forward(x, params))
    ref = jax.block_until_ready(block_forward_ref(x, params))

    assert out.shape == (N, C_OUT, H, W), out.shape
    assert jnp.allclose(out, ref, atol=2e-4, rtol=2e-4), \
        float(jnp.max(jnp.abs(out - ref)))

    print("KERNEL_OK")
</pallas_src>

<mosaic_0001>
module attributes {stable_mosaic.version = 11 : i64} {
  func.func @_fused_block_kernel(%arg0: i32, %arg1: memref<2x16x64xf32, #tpu.memory_space<vmem>>, %arg2: memref<9x64xf32, #tpu.memory_space<vmem>>, %arg3: memref<64x128xf32, #tpu.memory_space<vmem>>, %arg4: memref<1x128xf32, #tpu.memory_space<vmem>>, %arg5: memref<9x128xf32, #tpu.memory_space<vmem>>, %arg6: memref<128x128xf32, #tpu.memory_space<vmem>>, %arg7: memref<1x128xf32, #tpu.memory_space<vmem>>, %arg8: memref<2x16x128xf32, #tpu.memory_space<vmem>>) attributes {dimension_semantics = [#tpu.dimension_semantics<parallel>], iteration_bounds = array<i64: 1>, scalar_prefetch = 0 : i64, scratch_operands = 0 : i64, tpu.core_type = #tpu.core_type<tc>, window_params = [{transform_indices = @transform_0, window_bounds = array<i64: 2, 16, 64>}, {pipeline_mode = #tpu.pipeline_mode<synchronous>, transform_indices = @transform_1, window_bounds = array<i64: 9, 64>}, {pipeline_mode = #tpu.pipeline_mode<synchronous>, transform_indices = @transform_2, window_bounds = array<i64: 64, 128>}, {pipeline_mode = #tpu.pipeline_mode<synchronous>, transform_indices = @transform_3, window_bounds = array<i64: 1, 128>}, {pipeline_mode = #tpu.pipeline_mode<synchronous>, transform_indices = @transform_4, window_bounds = array<i64: 9, 128>}, {pipeline_mode = #tpu.pipeline_mode<synchronous>, transform_indices = @transform_5, window_bounds = array<i64: 128, 128>}, {pipeline_mode = #tpu.pipeline_mode<synchronous>, transform_indices = @transform_6, window_bounds = array<i64: 1, 128>}, {transform_indices = @transform_7, window_bounds = array<i64: 2, 16, 128>}]} {
    %c0 = arith.constant 0 : index
    %c0_0 = arith.constant 0 : index
    %c0_1 = arith.constant 0 : index
    %0 = vector.load %arg1[%c0, %c0_0, %c0_1] : memref<2x16x64xf32, #tpu.memory_space<vmem>>, vector<1x16x64xf32>
    %1 = vector.shape_cast %0 : vector<1x16x64xf32> to vector<16x64xf32>
    %2 = tpu.iota {dimensions = array<i32: 0>} : vector<16x64xi32>
    %3 = tpu.iota {dimensions = array<i32: 1>} : vector<16x64xi32>
    %cst = arith.constant 0.000000e+00 : f32
    %4 = vector.broadcast %cst : f32 to vector<16x64xf32>
    %c1_i32 = arith.constant 1 : i32
    %5 = tpu.dynamic_rotate %1 by %c1_i32 dim 0 : vector<16x64xf32>, i32 -> vector<16x64xf32>
    %c1_i32_2 = arith.constant 1 : i32
    %6 = vector.broadcast %c1_i32_2 : i32 to vector<16x64xi32>
    %7 = arith.cmpi sge, %2, %6 : vector<16x64xi32>
    %cst_3 = arith.constant 0.000000e+00 : f32
    %8 = vector.broadcast %cst_3 : f32 to vector<16x64xf32>
    %9 = arith.select %7, %5, %8 : vector<16x64xi1>, vector<16x64xf32>
    %c4_i32 = arith.constant 4 : i32
    %10 = tpu.dynamic_rotate %9 by %c4_i32 dim 1 : vector<16x64xf32>, i32 -> vector<16x64xf32>
    %c4_i32_4 = arith.constant 4 : i32
    %11 = vector.broadcast %c4_i32_4 : i32 to vector<16x64xi32>
    %12 = arith.cmpi sge, %3, %11 : vector<16x64xi32>
    %cst_5 = arith.constant 0.000000e+00 : f32
    %13 = vector.broadcast %cst_5 : f32 to vector<16x64xf32>
    %14 = arith.select %12, %10, %13 : vector<16x64xi1>, vector<16x64xf32>
    %c0_6 = arith.constant 0 : index
    %c0_7 = arith.constant 0 : index
    %15 = vector.load %arg2[%c0_6, %c0_7] : memref<9x64xf32, #tpu.memory_space<vmem>>, vector<1x64xf32>
    %16 = vector.shape_cast %15 : vector<1x64xf32> to vector<64xf32>
    %17 = vector.shape_cast %16 : vector<64xf32> to vector<1x64xf32>
    %18 = vector.broadcast %17 : vector<1x64xf32> to vector<16x64xf32>
    %19 = arith.mulf %14, %18 : vector<16x64xf32>
    %20 = arith.addf %4, %19 : vector<16x64xf32>
    %c1_i32_8 = arith.constant 1 : i32
    %21 = tpu.dynamic_rotate %1 by %c1_i32_8 dim 0 : vector<16x64xf32>, i32 -> vector<16x64xf32>
    %c1_i32_9 = arith.constant 1 : i32
    %22 = vector.broadcast %c1_i32_9 : i32 to vector<16x64xi32>
    %23 = arith.cmpi sge, %2, %22 : vector<16x64xi32>
    %cst_10 = arith.constant 0.000000e+00 : f32
    %24 = vector.broadcast %cst_10 : f32 to vector<16x64xf32>
    %25 = arith.select %23, %21, %24 : vector<16x64xi1>, vector<16x64xf32>
    %c1 = arith.constant 1 : index
    %c0_11 = arith.constant 0 : index
    %26 = vector.load %arg2[%c1, %c0_11] : memref<9x64xf32, #tpu.memory_space<vmem>>, vector<1x64xf32>
    %27 = vector.shape_cast %26 : vector<1x64xf32> to vector<64xf32>
    %28 = vector.shape_cast %27 : vector<64xf32> to vector<1x64xf32>
    %29 = vector.broadcast %28 : vector<1x64xf32> to vector<16x64xf32>
    %30 = arith.mulf %25, %29 : vector<16x64xf32>
    %31 = arith.addf %20, %30 : vector<16x64xf32>
    %c1_i32_12 = arith.constant 1 : i32
    %32 = tpu.dynamic_rotate %1 by %c1_i32_12 dim 0 : vector<16x64xf32>, i32 -> vector<16x64xf32>
    %c1_i32_13 = arith.constant 1 : i32
    %33 = vector.broadcast %c1_i32_13 : i32 to vector<16x64xi32>
    %34 = arith.cmpi sge, %2, %33 : vector<16x64xi32>
    %cst_14 = arith.constant 0.000000e+00 : f32
    %35 = vector.broadcast %cst_14 : f32 to vector<16x64xf32>
    %36 = arith.select %34, %32, %35 : vector<16x64xi1>, vector<16x64xf32>
    %c60_i32 = arith.constant 60 : i32
    %37 = tpu.dynamic_rotate %36 by %c60_i32 dim 1 : vector<16x64xf32>, i32 -> vector<16x64xf32>
    %c60_i32_15 = arith.constant 60 : i32
    %38 = vector.broadcast %c60_i32_15 : i32 to vector<16x64xi32>
    %39 = arith.cmpi slt, %3, %38 : vector<16x64xi32>
    %cst_16 = arith.constant 0.000000e+00 : f32
    %40 = vector.broadcast %cst_16 : f32 to vector<16x64xf32>
    %41 = arith.select %39, %37, %40 : vector<16x64xi1>, vector<16x64xf32>
    %c2 = arith.constant 2 : index
    %c0_17 = arith.constant 0 : index
    %42 = vector.load %arg2[%c2, %c0_17] : memref<9x64xf32, #tpu.memory_space<vmem>>, vector<1x64xf32>
    %43 = vector.shape_cast %42 : vector<1x64xf32> to vector<64xf32>
    %44 = vector.shape_cast %43 : vector<64xf32> to vector<1x64xf32>
    %45 = vector.broadcast %44 : vector<1x64xf32> to vector<16x64xf32>
    %46 = arith.mulf %41, %45 : vector<16x64xf32>
    %47 = arith.addf %31, %46 : vector<16x64xf32>
    %c4_i32_18 = arith.constant 4 : i32
    %48 = tpu.dynamic_rotate %1 by %c4_i32_18 dim 1 : vector<16x64xf32>, i32 -> vector<16x64xf32>
    %c4_i32_19 = arith.constant 4 : i32
    %49 = vector.broadcast %c4_i32_19 : i32 to vector<16x64xi32>
    %50 = arith.cmpi sge, %3, %49 : vector<16x64xi32>
    %cst_20 = arith.constant 0.000000e+00 : f32
    %51 = vector.broadcast %cst_20 : f32 to vector<16x64xf32>
    %52 = arith.select %50, %48, %51 : vector<16x64xi1>, vector<16x64xf32>
    %c3 = arith.constant 3 : index
    %c0_21 = arith.constant 0 : index
    %53 = vector.load %arg2[%c3, %c0_21] : memref<9x64xf32, #tpu.memory_space<vmem>>, vector<1x64xf32>
    %54 = vector.shape_cast %53 : vector<1x64xf32> to vector<64xf32>
    %55 = vector.shape_cast %54 : vector<64xf32> to vector<1x64xf32>
    %56 = vector.broadcast %55 : vector<1x64xf32> to vector<16x64xf32>
    %57 = arith.mulf %52, %56 : vector<16x64xf32>
    %58 = arith.addf %47, %57 : vector<16x64xf32>
    %c4 = arith.constant 4 : index
    %c0_22 = arith.constant 0 : index
    %59 = vector.load %arg2[%c4, %c0_22] : memref<9x64xf32, #tpu.memory_space<vmem>>, vector<1x64xf32>
    %60 = vector.shape_cast %59 : vector<1x64xf32> to vector<64xf32>
    %61 = vector.shape_cast %60 : vector<64xf32> to vector<1x64xf32>
    %62 = vector.broadcast %61 : vector<1x64xf32> to vector<16x64xf32>
    %63 = arith.mulf %1, %62 : vector<16x64xf32>
    %64 = arith.addf %58, %63 : vector<16x64xf32>
    %c60_i32_23 = arith.constant 60 : i32
    %65 = tpu.dynamic_rotate %1 by %c60_i32_23 dim 1 : vector<16x64xf32>, i32 -> vector<16x64xf32>
    %c60_i32_24 = arith.constant 60 : i32
    %66 = vector.broadcast %c60_i32_24 : i32 to vector<16x64xi32>
    %67 = arith.cmpi slt, %3, %66 : vector<16x64xi32>
    %cst_25 = arith.constant 0.000000e+00 : f32
    %68 = vector.broadcast %cst_25 : f32 to vector<16x64xf32>
    %69 = arith.select %67, %65, %68 : vector<16x64xi1>, vector<16x64xf32>
    %c5 = arith.constant 5 : index
    %c0_26 = arith.constant 0 : index
    %70 = vector.load %arg2[%c5, %c0_26] : memref<9x64xf32, #tpu.memory_space<vmem>>, vector<1x64xf32>
    %71 = vector.shape_cast %70 : vector<1x64xf32> to vector<64xf32>
    %72 = vector.shape_cast %71 : vector<64xf32> to vector<1x64xf32>
    %73 = vector.broadcast %72 : vector<1x64xf32> to vector<16x64xf32>
    %74 = arith.mulf %69, %73 : vector<16x64xf32>
    %75 = arith.addf %64, %74 : vector<16x64xf32>
    %c15_i32 = arith.constant 15 : i32
    %76 = tpu.dynamic_rotate %1 by %c15_i32 dim 0 : vector<16x64xf32>, i32 -> vector<16x64xf32>
    %c15_i32_27 = arith.constant 15 : i32
    %77 = vector.broadcast %c15_i32_27 : i32 to vector<16x64xi32>
    %78 = arith.cmpi slt, %2, %77 : vector<16x64xi32>
    %cst_28 = arith.constant 0.000000e+00 : f32
    %79 = vector.broadcast %cst_28 : f32 to vector<16x64xf32>
    %80 = arith.select %78, %76, %79 : vector<16x64xi1>, vector<16x64xf32>
    %c4_i32_29 = arith.constant 4 : i32
    %81 = tpu.dynamic_rotate %80 by %c4_i32_29 dim 1 : vector<16x64xf32>, i32 -> vector<16x64xf32>
    %c4_i32_30 = arith.constant 4 : i32
    %82 = vector.broadcast %c4_i32_30 : i32 to vector<16x64xi32>
    %83 = arith.cmpi sge, %3, %82 : vector<16x64xi32>
    %cst_31 = arith.constant 0.000000e+00 : f32
    %84 = vector.broadcast %cst_31 : f32 to vector<16x64xf32>
    %85 = arith.select %83, %81, %84 : vector<16x64xi1>, vector<16x64xf32>
    %c6 = arith.constant 6 : index
    %c0_32 = arith.constant 0 : index
    %86 = vector.load %arg2[%c6, %c0_32] : memref<9x64xf32, #tpu.memory_space<vmem>>, vector<1x64xf32>
    %87 = vector.shape_cast %86 : vector<1x64xf32> to vector<64xf32>
    %88 = vector.shape_cast %87 : vector<64xf32> to vector<1x64xf32>
    %89 = vector.broadcast %88 : vector<1x64xf32> to vector<16x64xf32>
    %90 = arith.mulf %85, %89 : vector<16x64xf32>
    %91 = arith.addf %75, %90 : vector<16x64xf32>
    %c15_i32_33 = arith.constant 15 : i32
    %92 = tpu.dynamic_rotate %1 by %c15_i32_33 dim 0 : vector<16x64xf32>, i32 -> vector<16x64xf32>
    %c15_i32_34 = arith.constant 15 : i32
    %93 = vector.broadcast %c15_i32_34 : i32 to vector<16x64xi32>
    %94 = arith.cmpi slt, %2, %93 : vector<16x64xi32>
    %cst_35 = arith.constant 0.000000e+00 : f32
    %95 = vector.broadcast %cst_35 : f32 to vector<16x64xf32>
    %96 = arith.select %94, %92, %95 : vector<16x64xi1>, vector<16x64xf32>
    %c7 = arith.constant 7 : index
    %c0_36 = arith.constant 0 : index
    %97 = vector.load %arg2[%c7, %c0_36] : memref<9x64xf32, #tpu.memory_space<vmem>>, vector<1x64xf32>
    %98 = vector.shape_cast %97 : vector<1x64xf32> to vector<64xf32>
    %99 = vector.shape_cast %98 : vector<64xf32> to vector<1x64xf32>
    %100 = vector.broadcast %99 : vector<1x64xf32> to vector<16x64xf32>
    %101 = arith.mulf %96, %100 : vector<16x64xf32>
    %102 = arith.addf %91, %101 : vector<16x64xf32>
    %c15_i32_37 = arith.constant 15 : i32
    %103 = tpu.dynamic_rotate %1 by %c15_i32_37 dim 0 : vector<16x64xf32>, i32 -> vector<16x64xf32>
    %c15_i32_38 = arith.constant 15 : i32
    %104 = vector.broadcast %c15_i32_38 : i32 to vector<16x64xi32>
    %105 = arith.cmpi slt, %2, %104 : vector<16x64xi32>
    %cst_39 = arith.constant 0.000000e+00 : f32
    %106 = vector.broadcast %cst_39 : f32 to vector<16x64xf32>
    %107 = arith.select %105, %103, %106 : vector<16x64xi1>, vector<16x64xf32>
    %c60_i32_40 = arith.constant 60 : i32
    %108 = tpu.dynamic_rotate %107 by %c60_i32_40 dim 1 : vector<16x64xf32>, i32 -> vector<16x64xf32>
    %c60_i32_41 = arith.constant 60 : i32
    %109 = vector.broadcast %c60_i32_41 : i32 to vector<16x64xi32>
    %110 = arith.cmpi slt, %3, %109 : vector<16x64xi32>
    %cst_42 = arith.constant 0.000000e+00 : f32
    %111 = vector.broadcast %cst_42 : f32 to vector<16x64xf32>
    %112 = arith.select %110, %108, %111 : vector<16x64xi1>, vector<16x64xf32>
    %c8 = arith.constant 8 : index
    %c0_43 = arith.constant 0 : index
    %113 = vector.load %arg2[%c8, %c0_43] : memref<9x64xf32, #tpu.memory_space<vmem>>, vector<1x64xf32>
    %114 = vector.shape_cast %113 : vector<1x64xf32> to vector<64xf32>
    %115 = vector.shape_cast %114 : vector<64xf32> to vector<1x64xf32>
    %116 = vector.broadcast %115 : vector<1x64xf32> to vector<16x64xf32>
    %117 = arith.mulf %112, %116 : vector<16x64xf32>
    %118 = arith.addf %102, %117 : vector<16x64xf32>
    %c1_44 = arith.constant 1 : index
    %c0_45 = arith.constant 0 : index
    %c0_46 = arith.constant 0 : index
    %119 = vector.load %arg1[%c1_44, %c0_45, %c0_46] : memref<2x16x64xf32, #tpu.memory_space<vmem>>, vector<1x16x64xf32>
    %120 = vector.shape_cast %119 : vector<1x16x64xf32> to vector<16x64xf32>
    %121 = tpu.iota {dimensions = array<i32: 0>} : vector<16x64xi32>
    %122 = tpu.iota {dimensions = array<i32: 1>} : vector<16x64xi32>
    %cst_47 = arith.constant 0.000000e+00 : f32
    %123 = vector.broadcast %cst_47 : f32 to vector<16x64xf32>
    %c1_i32_48 = arith.constant 1 : i32
    %124 = tpu.dynamic_rotate %120 by %c1_i32_48 dim 0 : vector<16x64xf32>, i32 -> vector<16x64xf32>
    %c1_i32_49 = arith.constant 1 : i32
    %125 = vector.broadcast %c1_i32_49 : i32 to vector<16x64xi32>
    %126 = arith.cmpi sge, %121, %125 : vector<16x64xi32>
    %cst_50 = arith.constant 0.000000e+00 : f32
    %127 = vector.broadcast %cst_50 : f32 to vector<16x64xf32>
    %128 = arith.select %126, %124, %127 : vector<16x64xi1>, vector<16x64xf32>
    %c4_i32_51 = arith.constant 4 : i32
    %129 = tpu.dynamic_rotate %128 by %c4_i32_51 dim 1 : vector<16x64xf32>, i32 -> vector<16x64xf32>
    %c4_i32_52 = arith.constant 4 : i32
    %130 = vector.broadcast %c4_i32_52 : i32 to vector<16x64xi32>
    %131 = arith.cmpi sge, %122, %130 : vector<16x64xi32>
    %cst_53 = arith.constant 0.000000e+00 : f32
    %132 = vector.broadcast %cst_53 : f32 to vector<16x64xf32>
    %133 = arith.select %131, %129, %132 : vector<16x64xi1>, vector<16x64xf32>
    %c0_54 = arith.constant 0 : index
    %c0_55 = arith.constant 0 : index
    %134 = vector.load %arg2[%c0_54, %c0_55] : memref<9x64xf32, #tpu.memory_space<vmem>>, vector<1x64xf32>
    %135 = vector.shape_cast %134 : vector<1x64xf32> to vector<64xf32>
    %136 = vector.shape_cast %135 : vector<64xf32> to vector<1x64xf32>
    %137 = vector.broadcast %136 : vector<1x64xf32> to vector<16x64xf32>
    %138 = arith.mulf %133, %137 : vector<16x64xf32>
    %139 = arith.addf %123, %138 : vector<16x64xf32>
    %c1_i32_56 = arith.constant 1 : i32
    %140 = tpu.dynamic_rotate %120 by %c1_i32_56 dim 0 : vector<16x64xf32>, i32 -> vector<16x64xf32>
    %c1_i32_57 = arith.constant 1 : i32
    %141 = vector.broadcast %c1_i32_57 : i32 to vector<16x64xi32>
    %142 = arith.cmpi sge, %121, %141 : vector<16x64xi32>
    %cst_58 = arith.constant 0.000000e+00 : f32
    %143 = vector.broadcast %cst_58 : f32 to vector<16x64xf32>
    %144 = arith.select %142, %140, %143 : vector<16x64xi1>, vector<16x64xf32>
    %c1_59 = arith.constant 1 : index
    %c0_60 = arith.constant 0 : index
    %145 = vector.load %arg2[%c1_59, %c0_60] : memref<9x64xf32, #tpu.memory_space<vmem>>, vector<1x64xf32>
    %146 = vector.shape_cast %145 : vector<1x64xf32> to vector<64xf32>
    %147 = vector.shape_cast %146 : vector<64xf32> to vector<1x64xf32>
    %148 = vector.broadcast %147 : vector<1x64xf32> to vector<16x64xf32>
    %149 = arith.mulf %144, %148 : vector<16x64xf32>
    %150 = arith.addf %139, %149 : vector<16x64xf32>
    %c1_i32_61 = arith.constant 1 : i32
    %151 = tpu.dynamic_rotate %120 by %c1_i32_61 dim 0 : vector<16x64xf32>, i32 -> vector<16x64xf32>
    %c1_i32_62 = arith.constant 1 : i32
    %152 = vector.broadcast %c1_i32_62 : i32 to vector<16x64xi32>
    %153 = arith.cmpi sge, %121, %152 : vector<16x64xi32>
    %cst_63 = arith.constant 0.000000e+00 : f32
    %154 = vector.broadcast %cst_63 : f32 to vector<16x64xf32>
    %155 = arith.select %153, %151, %154 : vector<16x64xi1>, vector<16x64xf32>
    %c60_i32_64 = arith.constant 60 : i32
    %156 = tpu.dynamic_rotate %155 by %c60_i32_64 dim 1 : vector<16x64xf32>, i32 -> vector<16x64xf32>
    %c60_i32_65 = arith.constant 60 : i32
    %157 = vector.broadcast %c60_i32_65 : i32 to vector<16x64xi32>
    %158 = arith.cmpi slt, %122, %157 : vector<16x64xi32>
    %cst_66 = arith.constant 0.000000e+00 : f32
    %159 = vector.broadcast %cst_66 : f32 to vector<16x64xf32>
    %160 = arith.select %158, %156, %159 : vector<16x64xi1>, vector<16x64xf32>
    %c2_67 = arith.constant 2 : index
    %c0_68 = arith.constant 0 : index
    %161 = vector.load %arg2[%c2_67, %c0_68] : memref<9x64xf32, #tpu.memory_space<vmem>>, vector<1x64xf32>
    %162 = vector.shape_cast %161 : vector<1x64xf32> to vector<64xf32>
    %163 = vector.shape_cast %162 : vector<64xf32> to vector<1x64xf32>
    %164 = vector.broadcast %163 : vector<1x64xf32> to vector<16x64xf32>
    %165 = arith.mulf %160, %164 : vector<16x64xf32>
    %166 = arith.addf %150, %165 : vector<16x64xf32>
    %c4_i32_69 = arith.constant 4 : i32
    %167 = tpu.dynamic_rotate %120 by %c4_i32_69 dim 1 : vector<16x64xf32>, i32 -> vector<16x64xf32>
    %c4_i32_70 = arith.constant 4 : i32
    %168 = vector.broadcast %c4_i32_70 : i32 to vector<16x64xi32>
    %169 = arith.cmpi sge, %122, %168 : vector<16x64xi32>
    %cst_71 = arith.constant 0.000000e+00 : f32
    %170 = vector.broadcast %cst_71 : f32 to vector<16x64xf32>
    %171 = arith.select %169, %167, %170 : vector<16x64xi1>, vector<16x64xf32>
    %c3_72 = arith.constant 3 : index
    %c0_73 = arith.constant 0 : index
    %172 = vector.load %arg2[%c3_72, %c0_73] : memref<9x64xf32, #tpu.memory_space<vmem>>, vector<1x64xf32>
    %173 = vector.shape_cast %172 : vector<1x64xf32> to vector<64xf32>
    %174 = vector.shape_cast %173 : vector<64xf32> to vector<1x64xf32>
    %175 = vector.broadcast %174 : vector<1x64xf32> to vector<16x64xf32>
    %176 = arith.mulf %171, %175 : vector<16x64xf32>
    %177 = arith.addf %166, %176 : vector<16x64xf32>
    %c4_74 = arith.constant 4 : index
    %c0_75 = arith.constant 0 : index
    %178 = vector.load %arg2[%c4_74, %c0_75] : memref<9x64xf32, #tpu.memory_space<vmem>>, vector<1x64xf32>
    %179 = vector.shape_cast %178 : vector<1x64xf32> to vector<64xf32>
    %180 = vector.shape_cast %179 : vector<64xf32> to vector<1x64xf32>
    %181 = vector.broadcast %180 : vector<1x64xf32> to vector<16x64xf32>
    %182 = arith.mulf %120, %181 : vector<16x64xf32>
    %183 = arith.addf %177, %182 : vector<16x64xf32>
    %c60_i32_76 = arith.constant 60 : i32
    %184 = tpu.dynamic_rotate %120 by %c60_i32_76 dim 1 : vector<16x64xf32>, i32 -> vector<16x64xf32>
    %c60_i32_77 = arith.constant 60 : i32
    %185 = vector.broadcast %c60_i32_77 : i32 to vector<16x64xi32>
    %186 = arith.cmpi slt, %122, %185 : vector<16x64xi32>
    %cst_78 = arith.constant 0.000000e+00 : f32
    %187 = vector.broadcast %cst_78 : f32 to vector<16x64xf32>
    %188 = arith.select %186, %184, %187 : vector<16x64xi1>, vector<16x64xf32>
    %c5_79 = arith.constant 5 : index
    %c0_80 = arith.constant 0 : index
    %189 = vector.load %arg2[%c5_79, %c0_80] : memref<9x64xf32, #tpu.memory_space<vmem>>, vector<1x64xf32>
    %190 = vector.shape_cast %189 : vector<1x64xf32> to vector<64xf32>
    %191 = vector.shape_cast %190 : vector<64xf32> to vector<1x64xf32>
    %192 = vector.broadcast %191 : vector<1x64xf32> to vector<16x64xf32>
    %193 = arith.mulf %188, %192 : vector<16x64xf32>
    %194 = arith.addf %183, %193 : vector<16x64xf32>
    %c15_i32_81 = arith.constant 15 : i32
    %195 = tpu.dynamic_rotate %120 by %c15_i32_81 dim 0 : vector<16x64xf32>, i32 -> vector<16x64xf32>
    %c15_i32_82 = arith.constant 15 : i32
    %196 = vector.broadcast %c15_i32_82 : i32 to vector<16x64xi32>
    %197 = arith.cmpi slt, %121, %196 : vector<16x64xi32>
    %cst_83 = arith.constant 0.000000e+00 : f32
    %198 = vector.broadcast %cst_83 : f32 to vector<16x64xf32>
    %199 = arith.select %197, %195, %198 : vector<16x64xi1>, vector<16x64xf32>
    %c4_i32_84 = arith.constant 4 : i32
    %200 = tpu.dynamic_rotate %199 by %c4_i32_84 dim 1 : vector<16x64xf32>, i32 -> vector<16x64xf32>
    %c4_i32_85 = arith.constant 4 : i32
    %201 = vector.broadcast %c4_i32_85 : i32 to vector<16x64xi32>
    %202 = arith.cmpi sge, %122, %201 : vector<16x64xi32>
    %cst_86 = arith.constant 0.000000e+00 : f32
    %203 = vector.broadcast %cst_86 : f32 to vector<16x64xf32>
    %204 = arith.select %202, %200, %203 : vector<16x64xi1>, vector<16x64xf32>
    %c6_87 = arith.constant 6 : index
    %c0_88 = arith.constant 0 : index
    %205 = vector.load %arg2[%c6_87, %c0_88] : memref<9x64xf32, #tpu.memory_space<vmem>>, vector<1x64xf32>
    %206 = vector.shape_cast %205 : vector<1x64xf32> to vector<64xf32>
    %207 = vector.shape_cast %206 : vector<64xf32> to vector<1x64xf32>
    %208 = vector.broadcast %207 : vector<1x64xf32> to vector<16x64xf32>
    %209 = arith.mulf %204, %208 : vector<16x64xf32>
    %210 = arith.addf %194, %209 : vector<16x64xf32>
    %c15_i32_89 = arith.constant 15 : i32
    %211 = tpu.dynamic_rotate %120 by %c15_i32_89 dim 0 : vector<16x64xf32>, i32 -> vector<16x64xf32>
    %c15_i32_90 = arith.constant 15 : i32
    %212 = vector.broadcast %c15_i32_90 : i32 to vector<16x64xi32>
    %213 = arith.cmpi slt, %121, %212 : vector<16x64xi32>
    %cst_91 = arith.constant 0.000000e+00 : f32
    %214 = vector.broadcast %cst_91 : f32 to vector<16x64xf32>
    %215 = arith.select %213, %211, %214 : vector<16x64xi1>, vector<16x64xf32>
    %c7_92 = arith.constant 7 : index
    %c0_93 = arith.constant 0 : index
    %216 = vector.load %arg2[%c7_92, %c0_93] : memref<9x64xf32, #tpu.memory_space<vmem>>, vector<1x64xf32>
    %217 = vector.shape_cast %216 : vector<1x64xf32> to vector<64xf32>
    %218 = vector.shape_cast %217 : vector<64xf32> to vector<1x64xf32>
    %219 = vector.broadcast %218 : vector<1x64xf32> to vector<16x64xf32>
    %220 = arith.mulf %215, %219 : vector<16x64xf32>
    %221 = arith.addf %210, %220 : vector<16x64xf32>
    %c15_i32_94 = arith.constant 15 : i32
    %222 = tpu.dynamic_rotate %120 by %c15_i32_94 dim 0 : vector<16x64xf32>, i32 -> vector<16x64xf32>
    %c15_i32_95 = arith.constant 15 : i32
    %223 = vector.broadcast %c15_i32_95 : i32 to vector<16x64xi32>
    %224 = arith.cmpi slt, %121, %223 : vector<16x64xi32>
    %cst_96 = arith.constant 0.000000e+00 : f32
    %225 = vector.broadcast %cst_96 : f32 to vector<16x64xf32>
    %226 = arith.select %224, %222, %225 : vector<16x64xi1>, vector<16x64xf32>
    %c60_i32_97 = arith.constant 60 : i32
    %227 = tpu.dynamic_rotate %226 by %c60_i32_97 dim 1 : vector<16x64xf32>, i32 -> vector<16x64xf32>
    %c60_i32_98 = arith.constant 60 : i32
    %228 = vector.broadcast %c60_i32_98 : i32 to vector<16x64xi32>
    %229 = arith.cmpi slt, %122, %228 : vector<16x64xi32>
    %cst_99 = arith.constant 0.000000e+00 : f32
    %230 = vector.broadcast %cst_99 : f32 to vector<16x64xf32>
    %231 = arith.select %229, %227, %230 : vector<16x64xi1>, vector<16x64xf32>
    %c8_100 = arith.constant 8 : index
    %c0_101 = arith.constant 0 : index
    %232 = vector.load %arg2[%c8_100, %c0_101] : memref<9x64xf32, #tpu.memory_space<vmem>>, vector<1x64xf32>
    %233 = vector.shape_cast %232 : vector<1x64xf32> to vector<64xf32>
    %234 = vector.shape_cast %233 : vector<64xf32> to vector<1x64xf32>
    %235 = vector.broadcast %234 : vector<1x64xf32> to vector<16x64xf32>
    %236 = arith.mulf %231, %235 : vector<16x64xf32>
    %237 = arith.addf %221, %236 : vector<16x64xf32>
    %238 = tpu.concatenate %118, %237 in 0 : vector<16x64xf32>, vector<16x64xf32> -> vector<32x64xf32>
    %c0_102 = arith.constant 0 : index
    %c0_103 = arith.constant 0 : index
    %239 = vector.load %arg3[%c0_102, %c0_103] : memref<64x128xf32, #tpu.memory_space<vmem>>, vector<64x128xf32>
    %cst_104 = arith.constant dense<0.000000e+00> : vector<32x128xf32>
    %240 = tpu.matmul %238, %239, %cst_104 {dimension_numbers = #tpu.dot_dimension_numbers<[1], [0], [0], [1], [0, 0, 1, 1], [], []>} : vector<32x64xf32>, vector<64x128xf32>, vector<32x128xf32> -> vector<32x128xf32>
    %c0_105 = arith.constant 0 : index
    %c0_106 = arith.constant 0 : index
    %241 = vector.load %arg4[%c0_105, %c0_106] : memref<1x128xf32, #tpu.memory_space<vmem>>, vector<1x128xf32>
    %242 = vector.broadcast %241 : vector<1x128xf32> to vector<32x128xf32>
    %243 = arith.addf %240, %242 : vector<32x128xf32>
    %cst_107 = arith.constant 0.000000e+00 : f32
    %244 = vector.broadcast %cst_107 : f32 to vector<32x128xf32>
    %245 = arith.maximumf %243, %244 : vector<32x128xf32>
    %246 = vector.extract_strided_slice %245 {offsets = [0, 0], sizes = [16, 128], strides = [1, 1]} : vector<32x128xf32> to vector<16x128xf32>
    %247 = tpu.iota {dimensions = array<i32: 0>} : vector<16x128xi32>
    %248 = tpu.iota {dimensions = array<i32: 1>} : vector<16x128xi32>
    %cst_108 = arith.constant 0.000000e+00 : f32
    %249 = vector.broadcast %cst_108 : f32 to vector<16x128xf32>
    %c1_i32_109 = arith.constant 1 : i32
    %250 = tpu.dynamic_rotate %246 by %c1_i32_109 dim 0 : vector<16x128xf32>, i32 -> vector<16x128xf32>
    %c1_i32_110 = arith.constant 1 : i32
    %251 = vector.broadcast %c1_i32_110 : i32 to vector<16x128xi32>
    %252 = arith.cmpi sge, %247, %251 : vector<16x128xi32>
    %cst_111 = arith.constant 0.000000e+00 : f32
    %253 = vector.broadcast %cst_111 : f32 to vector<16x128xf32>
    %254 = arith.select %252, %250, %253 : vector<16x128xi1>, vector<16x128xf32>
    %c8_i32 = arith.constant 8 : i32
    %255 = tpu.dynamic_rotate %254 by %c8_i32 dim 1 : vector<16x128xf32>, i32 -> vector<16x128xf32>
    %c8_i32_112 = arith.constant 8 : i32
    %256 = vector.broadcast %c8_i32_112 : i32 to vector<16x128xi32>
    %257 = arith.cmpi sge, %248, %256 : vector<16x128xi32>
    %cst_113 = arith.constant 0.000000e+00 : f32
    %258 = vector.broadcast %cst_113 : f32 to vector<16x128xf32>
    %259 = arith.select %257, %255, %258 : vector<16x128xi1>, vector<16x128xf32>
    %c0_114 = arith.constant 0 : index
    %c0_115 = arith.constant 0 : index
    %260 = vector.load %arg5[%c0_114, %c0_115] : memref<9x128xf32, #tpu.memory_space<vmem>>, vector<1x128xf32>
    %261 = vector.shape_cast %260 : vector<1x128xf32> to vector<128xf32>
    %262 = vector.shape_cast %261 : vector<128xf32> to vector<1x128xf32>
    %263 = vector.broadcast %262 : vector<1x128xf32> to vector<16x128xf32>
    %264 = arith.mulf %259, %263 : vector<16x128xf32>
    %265 = arith.addf %249, %264 : vector<16x128xf32>
    %c1_i32_116 = arith.constant 1 : i32
    %266 = tpu.dynamic_rotate %246 by %c1_i32_116 dim 0 : vector<16x128xf32>, i32 -> vector<16x128xf32>
    %c1_i32_117 = arith.constant 1 : i32
    %267 = vector.broadcast %c1_i32_117 : i32 to vector<16x128xi32>
    %268 = arith.cmpi sge, %247, %267 : vector<16x128xi32>
    %cst_118 = arith.constant 0.000000e+00 : f32
    %269 = vector.broadcast %cst_118 : f32 to vector<16x128xf32>
    %270 = arith.select %268, %266, %269 : vector<16x128xi1>, vector<16x128xf32>
    %c1_119 = arith.constant 1 : index
    %c0_120 = arith.constant 0 : index
    %271 = vector.load %arg5[%c1_119, %c0_120] : memref<9x128xf32, #tpu.memory_space<vmem>>, vector<1x128xf32>
    %272 = vector.shape_cast %271 : vector<1x128xf32> to vector<128xf32>
    %273 = vector.shape_cast %272 : vector<128xf32> to vector<1x128xf32>
    %274 = vector.broadcast %273 : vector<1x128xf32> to vector<16x128xf32>
    %275 = arith.mulf %270, %274 : vector<16x128xf32>
    %276 = arith.addf %265, %275 : vector<16x128xf32>
    %c1_i32_121 = arith.constant 1 : i32
    %277 = tpu.dynamic_rotate %246 by %c1_i32_121 dim 0 : vector<16x128xf32>, i32 -> vector<16x128xf32>
    %c1_i32_122 = arith.constant 1 : i32
    %278 = vector.broadcast %c1_i32_122 : i32 to vector<16x128xi32>
    %279 = arith.cmpi sge, %247, %278 : vector<16x128xi32>
    %cst_123 = arith.constant 0.000000e+00 : f32
    %280 = vector.broadcast %cst_123 : f32 to vector<16x128xf32>
    %281 = arith.select %279, %277, %280 : vector<16x128xi1>, vector<16x128xf32>
    %c120_i32 = arith.constant 120 : i32
    %282 = tpu.dynamic_rotate %281 by %c120_i32 dim 1 : vector<16x128xf32>, i32 -> vector<16x128xf32>
    %c120_i32_124 = arith.constant 120 : i32
    %283 = vector.broadcast %c120_i32_124 : i32 to vector<16x128xi32>
    %284 = arith.cmpi slt, %248, %283 : vector<16x128xi32>
    %cst_125 = arith.constant 0.000000e+00 : f32
    %285 = vector.broadcast %cst_125 : f32 to vector<16x128xf32>
    %286 = arith.select %284, %282, %285 : vector<16x128xi1>, vector<16x128xf32>
    %c2_126 = arith.constant 2 : index
    %c0_127 = arith.constant 0 : index
    %287 = vector.load %arg5[%c2_126, %c0_127] : memref<9x128xf32, #tpu.memory_space<vmem>>, vector<1x128xf32>
    %288 = vector.shape_cast %287 : vector<1x128xf32> to vector<128xf32>
    %289 = vector.shape_cast %288 : vector<128xf32> to vector<1x128xf32>
    %290 = vector.broadcast %289 : vector<1x128xf32> to vector<16x128xf32>
    %291 = arith.mulf %286, %290 : vector<16x128xf32>
    %292 = arith.addf %276, %291 : vector<16x128xf32>
    %c8_i32_128 = arith.constant 8 : i32
    %293 = tpu.dynamic_rotate %246 by %c8_i32_128 dim 1 : vector<16x128xf32>, i32 -> vector<16x128xf32>
    %c8_i32_129 = arith.constant 8 : i32
    %294 = vector.broadcast %c8_i32_129 : i32 to vector<16x128xi32>
    %295 = arith.cmpi sge, %248, %294 : vector<16x128xi32>
    %cst_130 = arith.constant 0.000000e+00 : f32
    %296 = vector.broadcast %cst_130 : f32 to vector<16x128xf32>
    %297 = arith.select %295, %293, %296 : vector<16x128xi1>, vector<16x128xf32>
    %c3_131 = arith.constant 3 : index
    %c0_132 = arith.constant 0 : index
    %298 = vector.load %arg5[%c3_131, %c0_132] : memref<9x128xf32, #tpu.memory_space<vmem>>, vector<1x128xf32>
    %299 = vector.shape_cast %298 : vector<1x128xf32> to vector<128xf32>
    %300 = vector.shape_cast %299 : vector<128xf32> to vector<1x128xf32>
    %301 = vector.broadcast %300 : vector<1x128xf32> to vector<16x128xf32>
    %302 = arith.mulf %297, %301 : vector<16x128xf32>
    %303 = arith.addf %292, %302 : vector<16x128xf32>
    %c4_133 = arith.constant 4 : index
    %c0_134 = arith.constant 0 : index
    %304 = vector.load %arg5[%c4_133, %c0_134] : memref<9x128xf32, #tpu.memory_space<vmem>>, vector<1x128xf32>
    %305 = vector.shape_cast %304 : vector<1x128xf32> to vector<128xf32>
    %306 = vector.shape_cast %305 : vector<128xf32> to vector<1x128xf32>
    %307 = vector.broadcast %306 : vector<1x128xf32> to vector<16x128xf32>
    %308 = arith.mulf %246, %307 : vector<16x128xf32>
    %309 = arith.addf %303, %308 : vector<16x128xf32>
    %c120_i32_135 = arith.constant 120 : i32
    %310 = tpu.dynamic_rotate %246 by %c120_i32_135 dim 1 : vector<16x128xf32>, i32 -> vector<16x128xf32>
    %c120_i32_136 = arith.constant 120 : i32
    %311 = vector.broadcast %c120_i32_136 : i32 to vector<16x128xi32>
    %312 = arith.cmpi slt, %248, %311 : vector<16x128xi32>
    %cst_137 = arith.constant 0.000000e+00 : f32
    %313 = vector.broadcast %cst_137 : f32 to vector<16x128xf32>
    %314 = arith.select %312, %310, %313 : vector<16x128xi1>, vector<16x128xf32>
    %c5_138 = arith.constant 5 : index
    %c0_139 = arith.constant 0 : index
    %315 = vector.load %arg5[%c5_138, %c0_139] : memref<9x128xf32, #tpu.memory_space<vmem>>, vector<1x128xf32>
    %316 = vector.shape_cast %315 : vector<1x128xf32> to vector<128xf32>
    %317 = vector.shape_cast %316 : vector<128xf32> to vector<1x128xf32>
    %318 = vector.broadcast %317 : vector<1x128xf32> to vector<16x128xf32>
    %319 = arith.mulf %314, %318 : vector<16x128xf32>
    %320 = arith.addf %309, %319 : vector<16x128xf32>
    %c15_i32_140 = arith.constant 15 : i32
    %321 = tpu.dynamic_rotate %246 by %c15_i32_140 dim 0 : vector<16x128xf32>, i32 -> vector<16x128xf32>
    %c15_i32_141 = arith.constant 15 : i32
    %322 = vector.broadcast %c15_i32_141 : i32 to vector<16x128xi32>
    %323 = arith.cmpi slt, %247, %322 : vector<16x128xi32>
    %cst_142 = arith.constant 0.000000e+00 : f32
    %324 = vector.broadcast %cst_142 : f32 to vector<16x128xf32>
    %325 = arith.select %323, %321, %324 : vector<16x128xi1>, vector<16x128xf32>
    %c8_i32_143 = arith.constant 8 : i32
    %326 = tpu.dynamic_rotate %325 by %c8_i32_143 dim 1 : vector<16x128xf32>, i32 -> vector<16x128xf32>
    %c8_i32_144 = arith.constant 8 : i32
    %327 = vector.broadcast %c8_i32_144 : i32 to vector<16x128xi32>
    %328 = arith.cmpi sge, %248, %327 : vector<16x128xi32>
    %cst_145 = arith.constant 0.000000e+00 : f32
    %329 = vector.broadcast %cst_145 : f32 to vector<16x128xf32>
    %330 = arith.select %328, %326, %329 : vector<16x128xi1>, vector<16x128xf32>
    %c6_146 = arith.constant 6 : index
    %c0_147 = arith.constant 0 : index
    %331 = vector.load %arg5[%c6_146, %c0_147] : memref<9x128xf32, #tpu.memory_space<vmem>>, vector<1x128xf32>
    %332 = vector.shape_cast %331 : vector<1x128xf32> to vector<128xf32>
    %333 = vector.shape_cast %332 : vector<128xf32> to vector<1x128xf32>
    %334 = vector.broadcast %333 : vector<1x128xf32> to vector<16x128xf32>
    %335 = arith.mulf %330, %334 : vector<16x128xf32>
    %336 = arith.addf %320, %335 : vector<16x128xf32>
    %c15_i32_148 = arith.constant 15 : i32
    %337 = tpu.dynamic_rotate %246 by %c15_i32_148 dim 0 : vector<16x128xf32>, i32 -> vector<16x128xf32>
    %c15_i32_149 = arith.constant 15 : i32
    %338 = vector.broadcast %c15_i32_149 : i32 to vector<16x128xi32>
    %339 = arith.cmpi slt, %247, %338 : vector<16x128xi32>
    %cst_150 = arith.constant 0.000000e+00 : f32
    %340 = vector.broadcast %cst_150 : f32 to vector<16x128xf32>
    %341 = arith.select %339, %337, %340 : vector<16x128xi1>, vector<16x128xf32>
    %c7_151 = arith.constant 7 : index
    %c0_152 = arith.constant 0 : index
    %342 = vector.load %arg5[%c7_151, %c0_152] : memref<9x128xf32, #tpu.memory_space<vmem>>, vector<1x128xf32>
    %343 = vector.shape_cast %342 : vector<1x128xf32> to vector<128xf32>
    %344 = vector.shape_cast %343 : vector<128xf32> to vector<1x128xf32>
    %345 = vector.broadcast %344 : vector<1x128xf32> to vector<16x128xf32>
    %346 = arith.mulf %341, %345 : vector<16x128xf32>
    %347 = arith.addf %336, %346 : vector<16x128xf32>
    %c15_i32_153 = arith.constant 15 : i32
    %348 = tpu.dynamic_rotate %246 by %c15_i32_153 dim 0 : vector<16x128xf32>, i32 -> vector<16x128xf32>
    %c15_i32_154 = arith.constant 15 : i32
    %349 = vector.broadcast %c15_i32_154 : i32 to vector<16x128xi32>
    %350 = arith.cmpi slt, %247, %349 : vector<16x128xi32>
    %cst_155 = arith.constant 0.000000e+00 : f32
    %351 = vector.broadcast %cst_155 : f32 to vector<16x128xf32>
    %352 = arith.select %350, %348, %351 : vector<16x128xi1>, vector<16x128xf32>
    %c120_i32_156 = arith.constant 120 : i32
    %353 = tpu.dynamic_rotate %352 by %c120_i32_156 dim 1 : vector<16x128xf32>, i32 -> vector<16x128xf32>
    %c120_i32_157 = arith.constant 120 : i32
    %354 = vector.broadcast %c120_i32_157 : i32 to vector<16x128xi32>
    %355 = arith.cmpi slt, %248, %354 : vector<16x128xi32>
    %cst_158 = arith.constant 0.000000e+00 : f32
    %356 = vector.broadcast %cst_158 : f32 to vector<16x128xf32>
    %357 = arith.select %355, %353, %356 : vector<16x128xi1>, vector<16x128xf32>
    %c8_159 = arith.constant 8 : index
    %c0_160 = arith.constant 0 : index
    %358 = vector.load %arg5[%c8_159, %c0_160] : memref<9x128xf32, #tpu.memory_space<vmem>>, vector<1x128xf32>
    %359 = vector.shape_cast %358 : vector<1x128xf32> to vector<128xf32>
    %360 = vector.shape_cast %359 : vector<128xf32> to vector<1x128xf32>
    %361 = vector.broadcast %360 : vector<1x128xf32> to vector<16x128xf32>
    %362 = arith.mulf %357, %361 : vector<16x128xf32>
    %363 = arith.addf %347, %362 : vector<16x128xf32>
    %364 = vector.extract_strided_slice %245 {offsets = [16, 0], sizes = [16, 128], strides = [1, 1]} : vector<32x128xf32> to vector<16x128xf32>
    %365 = tpu.iota {dimensions = array<i32: 0>} : vector<16x128xi32>
    %366 = tpu.iota {dimensions = array<i32: 1>} : vector<16x128xi32>
    %cst_161 = arith.constant 0.000000e+00 : f32
    %367 = vector.broadcast %cst_161 : f32 to vector<16x128xf32>
    %c1_i32_162 = arith.constant 1 : i32
    %368 = tpu.dynamic_rotate %364 by %c1_i32_162 dim 0 : vector<16x128xf32>, i32 -> vector<16x128xf32>
    %c1_i32_163 = arith.constant 1 : i32
    %369 = vector.broadcast %c1_i32_163 : i32 to vector<16x128xi32>
    %370 = arith.cmpi sge, %365, %369 : vector<16x128xi32>
    %cst_164 = arith.constant 0.000000e+00 : f32
    %371 = vector.broadcast %cst_164 : f32 to vector<16x128xf32>
    %372 = arith.select %370, %368, %371 : vector<16x128xi1>, vector<16x128xf32>
    %c8_i32_165 = arith.constant 8 : i32
    %373 = tpu.dynamic_rotate %372 by %c8_i32_165 dim 1 : vector<16x128xf32>, i32 -> vector<16x128xf32>
    %c8_i32_166 = arith.constant 8 : i32
    %374 = vector.broadcast %c8_i32_166 : i32 to vector<16x128xi32>
    %375 = arith.cmpi sge, %366, %374 : vector<16x128xi32>
    %cst_167 = arith.constant 0.000000e+00 : f32
    %376 = vector.broadcast %cst_167 : f32 to vector<16x128xf32>
    %377 = arith.select %375, %373, %376 : vector<16x128xi1>, vector<16x128xf32>
    %c0_168 = arith.constant 0 : index
    %c0_169 = arith.constant 0 : index
    %378 = vector.load %arg5[%c0_168, %c0_169] : memref<9x128xf32, #tpu.memory_space<vmem>>, vector<1x128xf32>
    %379 = vector.shape_cast %378 : vector<1x128xf32> to vector<128xf32>
    %380 = vector.shape_cast %379 : vector<128xf32> to vector<1x128xf32>
    %381 = vector.broadcast %380 : vector<1x128xf32> to vector<16x128xf32>
    %382 = arith.mulf %377, %381 : vector<16x128xf32>
    %383 = arith.addf %367, %382 : vector<16x128xf32>
    %c1_i32_170 = arith.constant 1 : i32
    %384 = tpu.dynamic_rotate %364 by %c1_i32_170 dim 0 : vector<16x128xf32>, i32 -> vector<16x128xf32>
    %c1_i32_171 = arith.constant 1 : i32
    %385 = vector.broadcast %c1_i32_171 : i32 to vector<16x128xi32>
    %386 = arith.cmpi sge, %365, %385 : vector<16x128xi32>
    %cst_172 = arith.constant 0.000000e+00 : f32
    %387 = vector.broadcast %cst_172 : f32 to vector<16x128xf32>
    %388 = arith.select %386, %384, %387 : vector<16x128xi1>, vector<16x128xf32>
    %c1_173 = arith.constant 1 : index
    %c0_174 = arith.constant 0 : index
    %389 = vector.load %arg5[%c1_173, %c0_174] : memref<9x128xf32, #tpu.memory_space<vmem>>, vector<1x128xf32>
    %390 = vector.shape_cast %389 : vector<1x128xf32> to vector<128xf32>
    %391 = vector.shape_cast %390 : vector<128xf32> to vector<1x128xf32>
    %392 = vector.broadcast %391 : vector<1x128xf32> to vector<16x128xf32>
    %393 = arith.mulf %388, %392 : vector<16x128xf32>
    %394 = arith.addf %383, %393 : vector<16x128xf32>
    %c1_i32_175 = arith.constant 1 : i32
    %395 = tpu.dynamic_rotate %364 by %c1_i32_175 dim 0 : vector<16x128xf32>, i32 -> vector<16x128xf32>
    %c1_i32_176 = arith.constant 1 : i32
    %396 = vector.broadcast %c1_i32_176 : i32 to vector<16x128xi32>
    %397 = arith.cmpi sge, %365, %396 : vector<16x128xi32>
    %cst_177 = arith.constant 0.000000e+00 : f32
    %398 = vector.broadcast %cst_177 : f32 to vector<16x128xf32>
    %399 = arith.select %397, %395, %398 : vector<16x128xi1>, vector<16x128xf32>
    %c120_i32_178 = arith.constant 120 : i32
    %400 = tpu.dynamic_rotate %399 by %c120_i32_178 dim 1 : vector<16x128xf32>, i32 -> vector<16x128xf32>
    %c120_i32_179 = arith.constant 120 : i32
    %401 = vector.broadcast %c120_i32_179 : i32 to vector<16x128xi32>
    %402 = arith.cmpi slt, %366, %401 : vector<16x128xi32>
    %cst_180 = arith.constant 0.000000e+00 : f32
    %403 = vector.broadcast %cst_180 : f32 to vector<16x128xf32>
    %404 = arith.select %402, %400, %403 : vector<16x128xi1>, vector<16x128xf32>
    %c2_181 = arith.constant 2 : index
    %c0_182 = arith.constant 0 : index
    %405 = vector.load %arg5[%c2_181, %c0_182] : memref<9x128xf32, #tpu.memory_space<vmem>>, vector<1x128xf32>
    %406 = vector.shape_cast %405 : vector<1x128xf32> to vector<128xf32>
    %407 = vector.shape_cast %406 : vector<128xf32> to vector<1x128xf32>
    %408 = vector.broadcast %407 : vector<1x128xf32> to vector<16x128xf32>
    %409 = arith.mulf %404, %408 : vector<16x128xf32>
    %410 = arith.addf %394, %409 : vector<16x128xf32>
    %c8_i32_183 = arith.constant 8 : i32
    %411 = tpu.dynamic_rotate %364 by %c8_i32_183 dim 1 : vector<16x128xf32>, i32 -> vector<16x128xf32>
    %c8_i32_184 = arith.constant 8 : i32
    %412 = vector.broadcast %c8_i32_184 : i32 to vector<16x128xi32>
    %413 = arith.cmpi sge, %366, %412 : vector<16x128xi32>
    %cst_185 = arith.constant 0.000000e+00 : f32
    %414 = vector.broadcast %cst_185 : f32 to vector<16x128xf32>
    %415 = arith.select %413, %411, %414 : vector<16x128xi1>, vector<16x128xf32>
    %c3_186 = arith.constant 3 : index
    %c0_187 = arith.constant 0 : index
    %416 = vector.load %arg5[%c3_186, %c0_187] : memref<9x128xf32, #tpu.memory_space<vmem>>, vector<1x128xf32>
    %417 = vector.shape_cast %416 : vector<1x128xf32> to vector<128xf32>
    %418 = vector.shape_cast %417 : vector<128xf32> to vector<1x128xf32>
    %419 = vector.broadcast %418 : vector<1x128xf32> to vector<16x128xf32>
    %420 = arith.mulf %415, %419 : vector<16x128xf32>
    %421 = arith.addf %410, %420 : vector<16x128xf32>
    %c4_188 = arith.constant 4 : index
    %c0_189 = arith.constant 0 : index
    %422 = vector.load %arg5[%c4_188, %c0_189] : memref<9x128xf32, #tpu.memory_space<vmem>>, vector<1x128xf32>
    %423 = vector.shape_cast %422 : vector<1x128xf32> to vector<128xf32>
    %424 = vector.shape_cast %423 : vector<128xf32> to vector<1x128xf32>
    %425 = vector.broadcast %424 : vector<1x128xf32> to vector<16x128xf32>
    %426 = arith.mulf %364, %425 : vector<16x128xf32>
    %427 = arith.addf %421, %426 : vector<16x128xf32>
    %c120_i32_190 = arith.constant 120 : i32
    %428 = tpu.dynamic_rotate %364 by %c120_i32_190 dim 1 : vector<16x128xf32>, i32 -> vector<16x128xf32>
    %c120_i32_191 = arith.constant 120 : i32
    %429 = vector.broadcast %c120_i32_191 : i32 to vector<16x128xi32>
    %430 = arith.cmpi slt, %366, %429 : vector<16x128xi32>
    %cst_192 = arith.constant 0.000000e+00 : f32
    %431 = vector.broadcast %cst_192 : f32 to vector<16x128xf32>
    %432 = arith.select %430, %428, %431 : vector<16x128xi1>, vector<16x128xf32>
    %c5_193 = arith.constant 5 : index
    %c0_194 = arith.constant 0 : index
    %433 = vector.load %arg5[%c5_193, %c0_194] : memref<9x128xf32, #tpu.memory_space<vmem>>, vector<1x128xf32>
    %434 = vector.shape_cast %433 : vector<1x128xf32> to vector<128xf32>
    %435 = vector.shape_cast %434 : vector<128xf32> to vector<1x128xf32>
    %436 = vector.broadcast %435 : vector<1x128xf32> to vector<16x128xf32>
    %437 = arith.mulf %432, %436 : vector<16x128xf32>
    %438 = arith.addf %427, %437 : vector<16x128xf32>
    %c15_i32_195 = arith.constant 15 : i32
    %439 = tpu.dynamic_rotate %364 by %c15_i32_195 dim 0 : vector<16x128xf32>, i32 -> vector<16x128xf32>
    %c15_i32_196 = arith.constant 15 : i32
    %440 = vector.broadcast %c15_i32_196 : i32 to vector<16x128xi32>
    %441 = arith.cmpi slt, %365, %440 : vector<16x128xi32>
    %cst_197 = arith.constant 0.000000e+00 : f32
    %442 = vector.broadcast %cst_197 : f32 to vector<16x128xf32>
    %443 = arith.select %441, %439, %442 : vector<16x128xi1>, vector<16x128xf32>
    %c8_i32_198 = arith.constant 8 : i32
    %444 = tpu.dynamic_rotate %443 by %c8_i32_198 dim 1 : vector<16x128xf32>, i32 -> vector<16x128xf32>
    %c8_i32_199 = arith.constant 8 : i32
    %445 = vector.broadcast %c8_i32_199 : i32 to vector<16x128xi32>
    %446 = arith.cmpi sge, %366, %445 : vector<16x128xi32>
    %cst_200 = arith.constant 0.000000e+00 : f32
    %447 = vector.broadcast %cst_200 : f32 to vector<16x128xf32>
    %448 = arith.select %446, %444, %447 : vector<16x128xi1>, vector<16x128xf32>
    %c6_201 = arith.constant 6 : index
    %c0_202 = arith.constant 0 : index
    %449 = vector.load %arg5[%c6_201, %c0_202] : memref<9x128xf32, #tpu.memory_space<vmem>>, vector<1x128xf32>
    %450 = vector.shape_cast %449 : vector<1x128xf32> to vector<128xf32>
    %451 = vector.shape_cast %450 : vector<128xf32> to vector<1x128xf32>
    %452 = vector.broadcast %451 : vector<1x128xf32> to vector<16x128xf32>
    %453 = arith.mulf %448, %452 : vector<16x128xf32>
    %454 = arith.addf %438, %453 : vector<16x128xf32>
    %c15_i32_203 = arith.constant 15 : i32
    %455 = tpu.dynamic_rotate %364 by %c15_i32_203 dim 0 : vector<16x128xf32>, i32 -> vector<16x128xf32>
    %c15_i32_204 = arith.constant 15 : i32
    %456 = vector.broadcast %c15_i32_204 : i32 to vector<16x128xi32>
    %457 = arith.cmpi slt, %365, %456 : vector<16x128xi32>
    %cst_205 = arith.constant 0.000000e+00 : f32
    %458 = vector.broadcast %cst_205 : f32 to vector<16x128xf32>
    %459 = arith.select %457, %455, %458 : vector<16x128xi1>, vector<16x128xf32>
    %c7_206 = arith.constant 7 : index
    %c0_207 = arith.constant 0 : index
    %460 = vector.load %arg5[%c7_206, %c0_207] : memref<9x128xf32, #tpu.memory_space<vmem>>, vector<1x128xf32>
    %461 = vector.shape_cast %460 : vector<1x128xf32> to vector<128xf32>
    %462 = vector.shape_cast %461 : vector<128xf32> to vector<1x128xf32>
    %463 = vector.broadcast %462 : vector<1x128xf32> to vector<16x128xf32>
    %464 = arith.mulf %459, %463 : vector<16x128xf32>
    %465 = arith.addf %454, %464 : vector<16x128xf32>
    %c15_i32_208 = arith.constant 15 : i32
    %466 = tpu.dynamic_rotate %364 by %c15_i32_208 dim 0 : vector<16x128xf32>, i32 -> vector<16x128xf32>
    %c15_i32_209 = arith.constant 15 : i32
    %467 = vector.broadcast %c15_i32_209 : i32 to vector<16x128xi32>
    %468 = arith.cmpi slt, %365, %467 : vector<16x128xi32>
    %cst_210 = arith.constant 0.000000e+00 : f32
    %469 = vector.broadcast %cst_210 : f32 to vector<16x128xf32>
    %470 = arith.select %468, %466, %469 : vector<16x128xi1>, vector<16x128xf32>
    %c120_i32_211 = arith.constant 120 : i32
    %471 = tpu.dynamic_rotate %470 by %c120_i32_211 dim 1 : vector<16x128xf32>, i32 -> vector<16x128xf32>
    %c120_i32_212 = arith.constant 120 : i32
    %472 = vector.broadcast %c120_i32_212 : i32 to vector<16x128xi32>
    %473 = arith.cmpi slt, %366, %472 : vector<16x128xi32>
    %cst_213 = arith.constant 0.000000e+00 : f32
    %474 = vector.broadcast %cst_213 : f32 to vector<16x128xf32>
    %475 = arith.select %473, %471, %474 : vector<16x128xi1>, vector<16x128xf32>
    %c8_214 = arith.constant 8 : index
    %c0_215 = arith.constant 0 : index
    %476 = vector.load %arg5[%c8_214, %c0_215] : memref<9x128xf32, #tpu.memory_space<vmem>>, vector<1x128xf32>
    %477 = vector.shape_cast %476 : vector<1x128xf32> to vector<128xf32>
    %478 = vector.shape_cast %477 : vector<128xf32> to vector<1x128xf32>
    %479 = vector.broadcast %478 : vector<1x128xf32> to vector<16x128xf32>
    %480 = arith.mulf %475, %479 : vector<16x128xf32>
    %481 = arith.addf %465, %480 : vector<16x128xf32>
    %482 = tpu.concatenate %363, %481 in 0 : vector<16x128xf32>, vector<16x128xf32> -> vector<32x128xf32>
    %c0_216 = arith.constant 0 : index
    %c0_217 = arith.constant 0 : index
    %483 = vector.load %arg6[%c0_216, %c0_217] : memref<128x128xf32, #tpu.memory_space<vmem>>, vector<128x128xf32>
    %cst_218 = arith.constant dense<0.000000e+00> : vector<32x128xf32>
    %484 = tpu.matmul %482, %483, %cst_218 {dimension_numbers = #tpu.dot_dimension_numbers<[1], [0], [0], [1], [0, 0, 1, 1], [], []>} : vector<32x128xf32>, vector<128x128xf32>, vector<32x128xf32> -> vector<32x128xf32>
    %c0_219 = arith.constant 0 : index
    %c0_220 = arith.constant 0 : index
    %485 = vector.load %arg7[%c0_219, %c0_220] : memref<1x128xf32, #tpu.memory_space<vmem>>, vector<1x128xf32>
    %486 = vector.broadcast %485 : vector<1x128xf32> to vector<32x128xf32>
    %487 = arith.addf %484, %486 : vector<32x128xf32>
    %cst_221 = arith.constant 0.000000e+00 : f32
    %488 = vector.broadcast %cst_221 : f32 to vector<32x128xf32>
    %489 = arith.maximumf %487, %488 : vector<32x128xf32>
    %490 = vector.shape_cast %489 : vector<32x128xf32> to vector<2x16x128xf32>
    %c0_222 = arith.constant 0 : index
    %c0_223 = arith.constant 0 : index
    %c0_224 = arith.constant 0 : index
    %491 = vector.load %arg8[%c0_222, %c0_223, %c0_224] : memref<2x16x128xf32, #tpu.memory_space<vmem>>, vector<2x16x128xf32>
    tpu.vector_store %arg8[%c0_222, %c0_223, %c0_224], %490 {strides = array<i32>} : memref<2x16x128xf32, #tpu.memory_space<vmem>>, vector<2x16x128xf32>,
    return
  }
  func.func @transform_0(%arg0: i32) -> (i32, i32, i32) {
    %c0_i32 = arith.constant 0 : i32
    %c0_i32_0 = arith.constant 0 : i32
    %c0_i32_1 = arith.constant 0 : i32
    return %arg0, %c0_i32, %c0_i32_0 : i32, i32, i32
  }
  func.func @transform_1(%arg0: i32) -> (i32, i32) {
    %c0_i32 = arith.constant 0 : i32
    %c0_i32_0 = arith.constant 0 : i32
    %c0_i32_1 = arith.constant 0 : i32
    return %c0_i32, %c0_i32_0 : i32, i32
  }
  func.func @transform_2(%arg0: i32) -> (i32, i32) {
    %c0_i32 = arith.constant 0 : i32
    %c0_i32_0 = arith.constant 0 : i32
    %c0_i32_1 = arith.constant 0 : i32
    return %c0_i32, %c0_i32_0 : i32, i32
  }
  func.func @transform_3(%arg0: i32) -> (i32, i32) {
    %c0_i32 = arith.constant 0 : i32
    %c0_i32_0 = arith.constant 0 : i32
    %c0_i32_1 = arith.constant 0 : i32
    return %c0_i32, %c0_i32_0 : i32, i32
  }
  func.func @transform_4(%arg0: i32) -> (i32, i32) {
    %c0_i32 = arith.constant 0 : i32
    %c0_i32_0 = arith.constant 0 : i32
    %c0_i32_1 = arith.constant 0 : i32
    return %c0_i32, %c0_i32_0 : i32, i32
  }
  func.func @transform_5(%arg0: i32) -> (i32, i32) {
    %c0_i32 = arith.constant 0 : i32
    %c0_i32_0 = arith.constant 0 : i32
    %c0_i32_1 = arith.constant 0 : i32
    return %c0_i32, %c0_i32_0 : i32, i32
  }
  func.func @transform_6(%arg0: i32) -> (i32, i32) {
    %c0_i32 = arith.constant 0 : i32
    %c0_i32_0 = arith.constant 0 : i32
    %c0_i32_1 = arith.constant 0 : i32
    return %c0_i32, %c0_i32_0 : i32, i32
  }
  func.func @transform_7(%arg0: i32) -> (i32, i32, i32) {
    %c0_i32 = arith.constant 0 : i32
    %c0_i32_0 = arith.constant 0 : i32
    %c0_i32_1 = arith.constant 0 : i32
    return %arg0, %c0_i32, %c0_i32_0 : i32, i32, i32
  }
}

</mosaic_0001>

<bundles_post_ra>
// kernel: tpu_custom_call.1
= control target key start
LH: loop header
LB: loop body
LE: loop exit
PB: predicated region body
PF: predicated region fallthrough
CT: control target
= control target key end

     0   :  { %12 = vsyncpa [#allocation3], 0  ;;  %s1591_s0 = inlined_call_operand.hbm [shape: f32[2,16,64], index: 0, kind: input, shape index: {}]   ;;  %s1592_s1 = inlined_call_operand.hbm [shape: f32[9,64], index: 1, kind: input, shape index: {}]   ;;  %s1593_s2 = inlined_call_operand.hbm [shape: f32[64,128], index: 2, kind: input, shape index: {}]   ;;  %s1594_s3 = inlined_call_operand.vmem [shape: f32[1,128], index: 3, kind: input, shape index: {}]   ;;  %s1595_s4 = inlined_call_operand.hbm [shape: f32[9,128], index: 4, kind: input, shape index: {}]   ;;  %s1596_s5 = inlined_call_operand.hbm [shape: f32[128,128], index: 5, kind: input, shape index: {}]   ;;  %s1597_s6 = inlined_call_operand.vmem [shape: f32[1,128], index: 6, kind: input, shape index: {}]   ;;  %s1598_s7 = inlined_call_operand.hbm [shape: f32[2,16,128], index: 7, kind: output, shape index: {}]  }
   0x1   :  { %13 = vsyncpa [#allocation6], 0 }
   0x2   :  { %14 = vsyncpa [#allocation9], 0 }
   0x3   :  { %15 = vsyncpa [#allocation4], 0  ;;  %s33_s26 = sshll.u32 %s1592_s1, 4  ;;  %s962_s27 = smov [#allocation5]   ;;  %s34_s26 = int_to_ptr.hbm [resolvable:$true] %s33_s26 }
   0x4   :  { %s35_s28 = sshll.u32 %s962_s27, 4  ;;  %s61_s8 = sshll.u32 %s1595_s4, 4  ;;  %s36_s28 = int_to_ptr.vmem [resolvable:$true] %s35_s28  ;;  %s62_s8 = int_to_ptr.hbm [resolvable:$true] %s61_s8 }
   0x5   :  { %s963_s9 = smov 128   ;;  %s964_s10 = smov 8  }
   0x6   :  { %41 = dma.hbm_to_vmem [thread:$0]  %s34_s26, 256, %s36_s28, [#allocation6], %s963_s9, %s963_s9, %s964_s10  }
   0x7   :  { %s965_s11 = smov [#allocation8]   ;;  %s20_s1 = sshll.u32 %s1591_s0, 4  ;;  %s21_s1 = int_to_ptr.hbm [resolvable:$true] %s20_s1 }
   0x8   :  { %s63_s12 = sshll.u32 %s965_s11, 4  ;;  %s46_s16 = sshll.u32 %s1593_s2, 4  ;;  %s64_s12 = int_to_ptr.vmem [resolvable:$true] %s63_s12  ;;  %s47_s16 = int_to_ptr.hbm [resolvable:$true] %s46_s16 }
   0x9   :  { %69 = dma.hbm_to_vmem [thread:$0]  %s62_s8, 256, %s64_s12, [#allocation9], %s963_s9, %s963_s9, %s964_s10  }
   0xa   :  { %s966_s17 = smov [#allocation2]   ;;  %s967_s19 = smov [#allocation7]  }
   0xb   :  { %s22_s18 = sshll.u32 %s966_s17, 4  ;;  %s48_s0 = sshll.u32 %s967_s19, 4  ;;  %s23_s18 = int_to_ptr.vmem [resolvable:$true] %s22_s18  ;;  %s49_s0 = int_to_ptr.vmem [resolvable:$true] %s48_s0 }
   0xc   :  { %28 = dma.hbm_to_vmem [thread:$0]  %s21_s1, 512, %s23_s18, [#allocation3], %s963_s9, %s963_s9, %s964_s10  }
   0xd   :  { %s74_s22 = sshll.u32 %s1596_s5, 4  ;;  %s968_s2 = smov [#allocation10]   ;;  %s75_s22 = int_to_ptr.hbm [resolvable:$true] %s74_s22 }
   0xe   :  { %54 = dma.hbm_to_vmem [thread:$0]  %s47_s16, 1024, %s49_s0, [#allocation6], %s963_s9, %s963_s9, %s964_s10  }
   0xf   :  { %s76_s23 = sshll.u32 %s968_s2, 4  ;;  %s77_s23 = int_to_ptr.vmem [resolvable:$true] %s76_s23 }
  0x10   :  { %82 = dma.hbm_to_vmem [thread:$0]  %s75_s22, 2048, %s77_s23, [#allocation9], %s963_s9, %s963_s9, %s964_s10  }
  0x11   :  { %954 = dma.done.wait [#allocation3], 512  }
  0x12   :  { %955 = vsyncadd [#allocation3], 4294966784 }
  0x13   :  { %956 = dma.done.wait [#allocation6], 1280  }
  0x14   :  { %957 = vsyncadd [#allocation6], 4294966016 }
  0x15   :  { %958 = dma.done.wait [#allocation9], 2304  }
  0x16   :  { %959 = vsyncadd [#allocation9], 4294964992  ;;  %v107_v0 = vlaneseq  ;;  %v1047_v2 = vld [vmem:[#allocation2] sm:$0xff]  ;;  %v1049_v3 = vld [vmem:[#allocation2 + $0x8] sm:$0xff]  ;;  %s969_s5 = smov 64   ;;  %vm121_vm4 = vcmask 1048064  }
  0x17   :  { %172 = vrot.lane.b32.xlu0 %v1047_v2, %s969_s5  ;;  %v112_v4 = vrot.slane %v1047_v2, 7  ;;  %v113_v5 = vrot.slane %v1049_v3, 7  ;;  %175 = vrot.lane.b32.xlu2 %v1049_v3, %s969_s5  ;;  %v220_v9 = vrot.slane %v1047_v2, 1  ;;  %v1072_v10 = vld [vmem:[#allocation2 + $0x10] sm:$0xff]  ;;  %v1074_v11 = vld [vmem:[#allocation2 + $0x18] sm:$0xff]  ;;  %v221_v13 = vrot.slane %v1049_v3, 1 }
  0x18   :  { %v1045_v1 = vshrl.u32 %v107_v0, 7  ;;  %v280_v14 = vrot.slane %v1072_v10, 7  ;;  %v281_v15 = vrot.slane %v1074_v11, 7  ;;  %v370_v22 = vrot.slane %v1072_v10, 1  ;;  %s970_s24 = smov 124   ;;  %s971_s25 = smov 68  }
  0x19   :  { %v371_v23 = vrot.slane %v1074_v11, 1  ;;  %vm430_vm7 = vcmask 523264   ;;  %s972_s28 = smov 120   ;;  %s973_s30 = smov [#allocation11]  }
  0x1a   :  { %vm114_vm0 = vcmp.lt.s32.totalorder %v1045_v1, 1  ;;  %vm117_vm1 = vcmp.ge.s32.totalorder %v1045_v1, 1  ;;  %v1060_v6 = vadd.s32 8, %v1045_v1  ;;  %vm222_vm2 = vcmp.lt.s32.totalorder %v1045_v1, 7  ;;  %v677_v1 = vld [vmem:[#allocation10 + $0x68] sm:$0xff]  ;;  %s725_s8 = sshll.u32 %s973_s30, 4  ;;  %s726_s8 = int_to_ptr.vmem [resolvable:$true] %s725_s8 }
  0x1b   :  { %v116_v7 = vsel %vm114_vm0, %v113_v5, %v112_v4  ;;  %v1066_v8 = vsel %vm114_vm0, %v112_v4, %v113_v5  ;;  %v283_v16 = vsel %vm114_vm0, %v281_v15, %v280_v14  ;;  %v1093_v18 = vsel %vm222_vm2, %v220_v9, %v221_v13  ;;  %s727_s13 = sshll.u32 %s1598_s7, 4  ;;  %s728_s13 = int_to_ptr.hbm [resolvable:$true] %s727_s13 }
  0x1c   :  { %125 = vrot.lane.b32.xlu1 %v1066_v8, %s969_s5  ;;  %v1078_v12 = vsel %vm117_vm1, %v116_v7, 0.0  ;;  %v1087_v17 = vsel %vm117_vm1, %v283_v16, 0.0  ;;  %v224_v19 = vsel %vm222_vm2, %v221_v13, %v220_v9  ;;  %vm226_vm3 = vcmp.lt.s32.totalorder %v1060_v6, 15  ;;  %v679_v6 = vld [vmem:[#allocation10 + $0x78] sm:$0xff] }
  0x1d   :  { %v1104_v20 = vsel %vm226_vm3, %v224_v19, 0.0  ;;  %v1108_v21 = vsel %vm114_vm0, %v280_v14, %v281_v15  ;;  %v373_v24 = vsel %vm222_vm2, %v371_v23, %v370_v22  ;;  %v1122_v25 = vsel %vm222_vm2, %v370_v22, %v371_v23  ;;  %746 = vmatpush.msra.mxu2 %v679_v6  ;;  %747 = vmatpush.msra.mxu3 %v679_v6 }
  0x1e   :  { %v1126_v26 = vsel %vm226_vm3, %v373_v24, 0.0  ;;  %684 = vmatpush.msra.mxu1 %v679_v6 }
  0x1f   :  { %122 = vrot.lane.b32.xlu0 %v1078_v12, %s969_s5  ;;  %286 = vrot.lane.b32.xlu2 %v1087_v17, %s969_s5 }
  0x24   :  { %229 = vrot.lane.b32.xlu1 %v1093_v18, %s969_s5 }
  0x27   :  { %232 = vrot.lane.b32.xlu0 %v1104_v20, %s969_s5  ;;  %289 = vrot.lane.b32.xlu2 %v1108_v21, %s969_s5 }
  0x2c   :  { %328 = vrot.lane.b32.xlu1 %v1072_v10, %s969_s5 }
  0x2f   :  { %376 = vrot.lane.b32.xlu0 %v1122_v25, %s969_s5  ;;  %379 = vrot.lane.b32.xlu2 %v1126_v26, %s969_s5 }
  0x34   :  { %331 = vrot.lane.b32.xlu1 %v1074_v11, %s969_s5 }
  0x71   :  { %v176_v27 = vpop.permute.xlu2 %175 }
  0x72   :  { %v177_v33 = vsel %vm121_vm4, %v176_v27, %v1049_v3 }
  0x79   :  { %v287_v28 = vpop.permute.xlu2 %286 }
  0x7a   :  { %v288_v40 = vsel %vm121_vm4, %v287_v28, %v1087_v17  ;;  %v425_v28 = vld [vmem:[#allocation7 + $0x38] sm:$0xff] }
  0x7b   :  { %451 = vmatpush.msra.mxu0 %v425_v28 }
  0x81   :  { %v290_v34 = vpop.permute.xlu2 %289 }
  0x82   :  { %v291_v36 = vsel %vm121_vm4, %v290_v34, %v1108_v21  ;;  %v421_v34 = vld [vmem:[#allocation7 + $0x18] sm:$0xff] }
  0x89   :  { %v173_v29 = vpop.permute.xlu0 %172  ;;  %v380_v43 = vpop.permute.xlu2 %379 }
  0x8a   :  { %v174_v30 = vsel %vm121_vm4, %v173_v29, %v1047_v2  ;;  %v381_v46 = vsel %vm121_vm4, %v380_v43, %v1126_v26  ;;  %v424_v29 = vld [vmem:[#allocation7 + $0x30] sm:$0xff] }
  0x8b   :  { %178 = vrot.lane.b32.xlu1 %v174_v30, %s969_s5  ;;  %452 = vmatpush.msra.mxu0 %v424_v29  ;;  %v1224_v43 = vld [vmem:[#allocation5 + $0x1] ss:$0 sm:$0xff] }
  0x8e   :  { %v126_v31 = vpop.permute.xlu1 %125 }
  0x8f   :  { %v127_v32 = vsel %vm121_vm4, %v126_v31, %v1066_v8  ;;  %v423_v31 = vld [vmem:[#allocation7 + $0x28] sm:$0xff] }
  0x90   :  { %130 = vrot.lane.b32.xlu2 %v127_v32, %s969_s5  ;;  %453 = vmatpush.msra.mxu0 %v423_v31  ;;  %v1269_v31 = vld [vmem:[#allocation5 + $0x7] ss:$0 sm:$0xff] }
  0x91   :  { %v123_v35 = vpop.permute.xlu0 %122 }
  0x92   :  { %v124_v49 = vsel %vm121_vm4, %v123_v35, %v1078_v12  ;;  %v420_v35 = vld [vmem:[#allocation7 + $0x10] sm:$0xff] }
  0x93   :  { %180 = vrot.lane.b32.xlu1 %v177_v33, %s969_s5  ;;  %v422_v33 = vld [vmem:[#allocation7 + $0x20] sm:$0xff] }
  0x94   :  { %454 = vmatpush.msra.mxu0 %v422_v33 }
  0x96   :  { %v230_v37 = vpop.permute.xlu1 %229  ;;  %455 = vmatpush.msra.mxu0 %v421_v34  ;;  %v259_v34 = vmul.f32 %v1269_v31, %v1093_v18 }
  0x97   :  { %v231_v38 = vsel %vm121_vm4, %v230_v37, %v1093_v18 }
  0x98   :  { %235 = vrot.lane.b32.xlu0 %v231_v38, %s969_s5  ;;  %294 = vrot.lane.b32.xlu2 %v291_v36, %s969_s5  ;;  %v419_v38 = vld [vmem:[#allocation7 + $0x8] sm:$0xff] }
  0x99   :  { %v233_v39 = vpop.permute.xlu0 %232  ;;  %456 = vmatpush.msra.mxu0 %v420_v35  ;;  %v1278_v35 = vld [vmem:[#allocation5 + $0x8] ss:$0 sm:$0xff] }
  0x9a   :  { %v234_v50 = vsel %vm121_vm4, %v233_v39, %v1104_v20  ;;  %v1219_v39 = vand.u32 127, %v107_v0 }
  0x9b   :  { %457 = vmatpush.msra.mxu0 %v419_v38 }
  0x9c   :  { %vm134_vm5 = vcmp.ge.s32.totalorder %v1219_v39, 4  ;;  %vm157_vm6 = vcmp.lt.s32.totalorder %v1219_v39, 60  ;;  %vm486_vm8 = vcmp.ge.s32.totalorder %v1219_v39, 8  ;;  %vm505_vm9 = vcmp.lt.s32.totalorder %v1219_v39, 120 }
  0x9e   :  { %v329_v41 = vpop.permute.xlu1 %328 }
  0x9f   :  { %v330_v42 = vsel %vm121_vm4, %v329_v41, %v1072_v10 }
  0xa0   :  { %334 = vrot.lane.b32.xlu1 %v330_v42, %s969_s5  ;;  %292 = vrot.lane.b32.xlu2 %v288_v40, %s969_s5  ;;  %v418_v40 = vld [vmem:[#allocation7] sm:$0xff]  ;;  %v1222_v42 = vld [vmem:[#allocation5] ss:$0 sm:$0xff] }
  0xa1   :  { %v377_v44 = vpop.permute.xlu0 %376  ;;  %458 = vmatpush.msra.mxu0 %v418_v40 }
  0xa2   :  { %v378_v45 = vsel %vm121_vm4, %v377_v44, %v1122_v25 }
  0xa3   :  { %382 = vrot.lane.b32.xlu0 %v378_v45, %s969_s5 }
  0xa6   :  { %v332_v47 = vpop.permute.xlu1 %331 }
  0xa7   :  { %v333_v48 = vsel %vm121_vm4, %v332_v47, %v1074_v11  ;;  %v154_v47 = vmul.f32 %v1224_v43, %v1066_v8 }
  0xa8   :  { %336 = vrot.lane.b32.xlu1 %v333_v48, %s969_s5  ;;  %384 = vrot.lane.b32.xlu2 %v381_v46, %s969_s5  ;;  %v1232_v48 = vld [vmem:[#allocation5 + $0x2] ss:$0 sm:$0xff] }
  0xab   :  { %128 = vrot.lane.b32.xlu0 %v124_v49, %s969_s5 }
  0xb3   :  { %237 = vrot.lane.b32.xlu0 %v234_v50, %s969_s5 }
  0xea   :  { %v131_v53 = vpop.permute.xlu2 %130 }
  0xeb   :  { %v133_v55 = vsel %vm121_vm4, %v131_v53, %v1066_v8  ;;  %v153_v53 = vmul.f32 %v1224_v43, %v1078_v12 }
  0xf2   :  { %v295_v61 = vpop.permute.xlu2 %294 }
  0xf3   :  { %v297_v62 = vsel %vm121_vm4, %v295_v61, %v1108_v21 }
  0xfa   :  { %v293_v7 = vpop.permute.xlu2 %292 }
  0xfb   :  { %v296_v14 = vsel %vm121_vm4, %v293_v7, %v1087_v17  ;;  %v1257_v7 = vld [vmem:[#allocation5 + $0x5] ss:$0 sm:$0xff] }
  0xfd   :  { %v179_v51 = vpop.permute.xlu1 %178 }
  0xfe   :  { %v182_v52 = vsel %vm121_vm4, %v179_v51, %v1047_v2 }
  0xff   :  { %206 = vrot.lane.b32.xlu1 %v182_v52, %s970_s24  ;;  %186 = vrot.lane.b32.xlu2 %v182_v52, %s971_s25 }
 0x102   :  { %v385_v22 = vpop.permute.xlu2 %384 }
 0x103   :  { %v387_v23 = vsel %vm121_vm4, %v385_v22, %v1126_v26 }
 0x105   :  { %v181_v54 = vpop.permute.xlu1 %180 }
 0x106   :  { %v183_v56 = vsel %vm121_vm4, %v181_v54, %v1049_v3 }
 0x107   :  { %160 = vrot.lane.b32.xlu2 %v133_v55, %s970_s24  ;;  %208 = vrot.lane.b32.xlu0 %v183_v56, %s970_s24 }
 0x108   :  { %188 = vrot.lane.b32.xlu1 %v183_v56, %s971_s25 }
 0x10a   :  { %v236_v57 = vpop.permute.xlu0 %235 }
 0x10b   :  { %v239_v58 = vsel %vm121_vm4, %v236_v57, %v1093_v18 }
 0x10f   :  { %263 = vrot.lane.b32.xlu2 %v239_v58, %s970_s24  ;;  %139 = vrot.lane.b32.xlu0 %v133_v55, %s971_s25  ;;  %v1241_v55 = vld [vmem:[#allocation5 + $0x3] ss:$0 sm:$0xff] }
 0x112   :  { %v335_v59 = vpop.permute.xlu1 %334 }
 0x113   :  { %v338_v60 = vsel %vm121_vm4, %v335_v59, %v1072_v10  ;;  %v1249_v59 = vld [vmem:[#allocation5 + $0x4] ss:$0 sm:$0xff] }
 0x114   :  { %342 = vrot.lane.b32.xlu1 %v338_v60, %s971_s25 }
 0x115   :  { %v383_v63 = vpop.permute.xlu0 %382 }
 0x116   :  { %v386_v19 = vsel %vm121_vm4, %v383_v63, %v1122_v25 }
 0x117   :  { %243 = vrot.lane.b32.xlu0 %v239_v58, %s971_s25  ;;  %318 = vrot.lane.b32.xlu2 %v297_v62, %s970_s24 }
 0x11a   :  { %v337_v15 = vpop.permute.xlu1 %336 }
 0x11b   :  { %v339_v16 = vsel %vm121_vm4, %v337_v15, %v1074_v11  ;;  %v202_v15 = vmul.f32 %v1249_v59, %v1047_v2 }
 0x11d   :  { %v129_v4 = vpop.permute.xlu0 %128 }
 0x11e   :  { %v132_v5 = vsel %vm121_vm4, %v129_v4, %v1078_v12 }
 0x11f   :  { %137 = vrot.lane.b32.xlu0 %v132_v5, %s971_s25  ;;  %158 = vrot.lane.b32.xlu1 %v132_v5, %s970_s24 }
 0x125   :  { %v238_v9 = vpop.permute.xlu0 %237 }
 0x126   :  { %v240_v13 = vsel %vm121_vm4, %v238_v9, %v1104_v20 }
 0x127   :  { %245 = vrot.lane.b32.xlu2 %v240_v13, %s971_s25  ;;  %302 = vrot.lane.b32.xlu0 %v297_v62, %s971_s25 }
 0x128   :  { %300 = vrot.lane.b32.xlu1 %v296_v14, %s971_s25 }
 0x12f   :  { %265 = vrot.lane.b32.xlu2 %v240_v13, %s970_s24  ;;  %316 = vrot.lane.b32.xlu0 %v296_v14, %s970_s24  ;;  %v203_v13 = vmul.f32 %v1249_v59, %v1049_v3 }
 0x130   :  { %358 = vrot.lane.b32.xlu1 %v338_v60, %s970_s24 }
 0x137   :  { %406 = vrot.lane.b32.xlu2 %v386_v19, %s970_s24  ;;  %390 = vrot.lane.b32.xlu0 %v386_v19, %s971_s25 }
 0x138   :  { %344 = vrot.lane.b32.xlu1 %v339_v16, %s971_s25 }
 0x13f   :  { %360 = vrot.lane.b32.xlu0 %v339_v16, %s970_s24  ;;  %408 = vrot.lane.b32.xlu2 %v387_v23, %s970_s24 }
 0x140   :  { %392 = vrot.lane.b32.xlu1 %v387_v23, %s971_s25 }
 0x159   :  { %v187_v24 = vpop.permute.xlu2 %186 }
 0x15a   :  { %v192_v58 = vsel %vm134_vm5, %v187_v24, 0.0 }
 0x15b   :  { %v196_v5 = vmul.f32 %v1241_v55, %v192_v58 }
 0x161   :  { %v161_v32 = vpop.permute.xlu2 %160 }
 0x162   :  { %v165_v50 = vsel %vm157_vm6, %v161_v32, 0.0  ;;  %v1272_v32 = vld [vmem:[#allocation5 + $0x6] ss:$0 sm:$0xff] }
 0x163   :  { %v169_v52 = vmul.f32 %v1232_v48, %v165_v50 }
 0x169   :  { %v264_v41 = vpop.permute.xlu2 %263 }
 0x16a   :  { %v269_v38 = vsel %vm157_vm6, %v264_v41, 0.0 }
 0x171   :  { %v207_v27 = vpop.permute.xlu1 %206  ;;  %v1234_v49 = vpop.permute.xlu2 %318 }
 0x172   :  { %v212_v19 = vsel %vm157_vm6, %v207_v27, 0.0 }
 0x173   :  { %v216_v3 = vmul.f32 %v1257_v7, %v212_v19  ;;  %v402_v19 = vmul.f32 %v1269_v31, %v1122_v25 }
 0x179   :  { %v209_v30 = vpop.permute.xlu0 %208 }
 0x17a   :  { %v189_v36 = vpop.permute.xlu1 %188  ;;  %v213_v24 = vsel %vm157_vm6, %v209_v30, 0.0 }
 0x17b   :  { %v193_v56 = vsel %vm134_vm5, %v189_v36, 0.0  ;;  %v217_v30 = vmul.f32 %v1257_v7, %v213_v24 }
 0x17c   :  { %v197_v62 = vmul.f32 %v1241_v55, %v193_v56 }
 0x181   :  { %v140_v37 = vpop.permute.xlu0 %139  ;;  %v246_v9 = vpop.permute.xlu2 %245 }
 0x182   :  { %v144_v44 = vsel %vm134_vm5, %v140_v37, 0.0  ;;  %v250_v40 = vsel %vm134_vm5, %v246_v9, 0.0 }
 0x183   :  { %v148_v0 = vmul.f32 %v1222_v42, %v144_v44  ;;  %v254_v50 = vmul.f32 %v1272_v32, %v250_v40 }
 0x185   :  { %v156_v51 = vadd.f32 %v154_v47, %v148_v0  ;;  %v273_v47 = vmul.f32 %v1278_v35, %v269_v38 }
 0x186   :  { %v343_v45 = vpop.permute.xlu1 %342 }
 0x187   :  { %v171_v60 = vadd.f32 %v169_v52, %v156_v51  ;;  %v260_v51 = vmul.f32 %v1269_v31, %v1104_v20  ;;  %v313_v20 = vmul.f32 %v1224_v43, %v1108_v21  ;;  %v323_v21 = vsel %vm157_vm6, %v1234_v49, 0.0 }
 0x189   :  { %v244_v46 = vpop.permute.xlu0 %243  ;;  %v199_v14 = vadd.f32 %v197_v62, %v171_v60  ;;  %v266_v52 = vpop.permute.xlu2 %265 }
 0x18a   :  { %v249_v28 = vsel %vm134_vm5, %v244_v46, 0.0  ;;  %v312_v46 = vmul.f32 %v1224_v43, %v1087_v17 }
 0x18b   :  { %v205_v2 = vadd.f32 %v203_v13, %v199_v14  ;;  %v253_v36 = vmul.f32 %v1272_v32, %v249_v28 }
 0x18d   :  { %v219_v44 = vadd.f32 %v217_v30, %v205_v2  ;;  %v355_v30 = vmul.f32 %v1249_v59, %v1074_v11  ;;  %v403_v11 = vmul.f32 %v1269_v31, %v1126_v26 }
 0x191   :  { %v138_v54 = vpop.permute.xlu0 %137  ;;  %v159_v57 = vpop.permute.xlu1 %158 }
 0x192   :  { %v143_v8 = vsel %vm134_vm5, %v138_v54, 0.0  ;;  %v164_v12 = vsel %vm157_vm6, %v159_v57, 0.0  ;;  %v348_v54 = vsel %vm134_vm5, %v343_v45, 0.0  ;;  %v256_v57 = vadd.f32 %v254_v50, %v219_v44  ;;  %v407_v49 = vpop.permute.xlu2 %406 }
 0x193   :  { %v147_v61 = vmul.f32 %v1222_v42, %v143_v8  ;;  %v168_v4 = vmul.f32 %v1232_v48, %v164_v12  ;;  %v350_v12 = vmul.f32 %v1241_v55, %v348_v54  ;;  %v412_v25 = vsel %vm157_vm6, %v407_v49, 0.0  ;;  %v678_v49 = vld [vmem:[#allocation10 + $0x70] sm:$0xff] }
 0x194   :  { %v262_v43 = vadd.f32 %v260_v51, %v256_v57  ;;  %748 = vmatpush.msra.mxu2 %v678_v49  ;;  %749 = vmatpush.msra.mxu3 %v678_v49 }
 0x195   :  { %v155_v63 = vadd.f32 %v153_v53, %v147_v61  ;;  %685 = vmatpush.msra.mxu1 %v678_v49  ;;  %v1501_v49 = vld [vmem:[#allocation8 + $0x7] ss:$0 sm:$0xff] }
 0x196   :  { %750 = vmatpush.msra.mxu2 %v677_v1  ;;  %751 = vmatpush.msra.mxu3 %v677_v1 }
 0x197   :  { %v170_v16 = vadd.f32 %v168_v4, %v155_v63  ;;  %v354_v63 = vmul.f32 %v1249_v59, %v1072_v10  ;;  %v270_v4 = vsel %vm157_vm6, %v266_v52, 0.0  ;;  %686 = vmatpush.msra.mxu1 %v677_v1 }
 0x199   :  { %v198_v22 = vadd.f32 %v196_v5, %v170_v16  ;;  %v303_v23 = vpop.permute.xlu0 %302  ;;  %v325_v16 = vmul.f32 %v1232_v48, %v323_v21 }
 0x19a   :  { %v301_v29 = vpop.permute.xlu1 %300  ;;  %v307_v56 = vsel %vm134_vm5, %v303_v23, 0.0 }
 0x19b   :  { %v204_v33 = vadd.f32 %v202_v15, %v198_v22  ;;  %v306_v27 = vsel %vm134_vm5, %v301_v29, 0.0  ;;  %v309_v45 = vmul.f32 %v1222_v42, %v307_v56 }
 0x19c   :  { %v308_v0 = vmul.f32 %v1222_v42, %v306_v27  ;;  %v274_v42 = vmul.f32 %v1278_v35, %v270_v4 }
 0x19d   :  { %v218_v37 = vadd.f32 %v216_v3, %v204_v33  ;;  %v315_v13 = vadd.f32 %v313_v20, %v309_v45 }
 0x19e   :  { %v314_v58 = vadd.f32 %v312_v46, %v308_v0  ;;  %v276_v24 = vadd.f32 %v274_v42, %v262_v43 }
 0x19f   :  { %v255_v18 = vadd.f32 %v253_v36, %v218_v37  ;;  %v327_v27 = vadd.f32 %v325_v16, %v315_v13  ;;  %v414_v36 = vmul.f32 %v1278_v35, %v412_v25  ;;  %v1456_v25 = vld [vmem:[#allocation8] ss:$0 sm:$0xff] }
 0x1a1   :  { %v317_v53 = vpop.permute.xlu0 %316  ;;  %v261_v41 = vadd.f32 %v259_v34, %v255_v18 }
 0x1a2   :  { %v322_v17 = vsel %vm157_vm6, %v317_v53, 0.0  ;;  %v359_v8 = vpop.permute.xlu1 %358 }
 0x1a3   :  { %v324_v60 = vmul.f32 %v1232_v48, %v322_v17  ;;  %v275_v61 = vadd.f32 %v273_v47, %v261_v41  ;;  %v364_v5 = vsel %vm157_vm6, %v359_v8, 0.0 }
 0x1a4   :  { %v366_v10 = vmul.f32 %v1257_v7, %v364_v5 }
 0x1a5   :  { %v326_v62 = vadd.f32 %v324_v60, %v314_v58  ;;  %742 = vmatmul.msk.f32.vlgmr.msra.gmra.mxu0 %vm430_vm7, %v275_v61 }
 0x1a7   :  { %v352_v9 = vadd.f32 %v350_v12, %v326_v62 }
 0x1a9   :  { %v356_v14 = vadd.f32 %v354_v63, %v352_v9  ;;  %v391_v15 = vpop.permute.xlu0 %390 }
 0x1aa   :  { %v396_v22 = vsel %vm134_vm5, %v391_v15, 0.0  ;;  %v345_v23 = vpop.permute.xlu1 %344 }
 0x1ab   :  { %v368_v28 = vadd.f32 %v366_v10, %v356_v14  ;;  %v398_v29 = vmul.f32 %v1272_v32, %v396_v22  ;;  %v349_v3 = vsel %vm134_vm5, %v345_v23, 0.0 }
 0x1ac   :  { %v351_v2 = vmul.f32 %v1241_v55, %v349_v3  ;;  %v409_v55 = vpop.permute.xlu2 %408  ;;  %v675_v3 = vld [vmem:[#allocation10 + $0x58] sm:$0xff] }
 0x1ad   :  { %v400_v33 = vadd.f32 %v398_v29, %v368_v28  ;;  %743 = vmatmul.msk.f32.gmra.mxu0 %vm430_vm7, %v276_v24  ;;  %v413_v59 = vsel %vm157_vm6, %v409_v55, 0.0  ;;  %v676_v29 = vld [vmem:[#allocation10 + $0x60] sm:$0xff]  ;;  %v670_v55 = vld [vmem:[#allocation10 + $0x30] sm:$0xff] }
 0x1ae   :  { %v353_v34 = vadd.f32 %v351_v2, %v327_v27  ;;  %v415_v52 = vmul.f32 %v1278_v35, %v413_v59  ;;  %752 = vmatpush.msra.mxu2 %v676_v29  ;;  %753 = vmatpush.msra.mxu3 %v676_v29  ;;  %v674_v2 = vld [vmem:[#allocation10 + $0x50] sm:$0xff] }
 0x1af   :  { %v404_v48 = vadd.f32 %v402_v19, %v400_v33  ;;  %687 = vmatpush.msra.mxu1 %v676_v29  ;;  %v673_v33 = vld [vmem:[#allocation10 + $0x48] sm:$0xff]  ;;  %v1454_v27 = vld [vmem:[#allocation8 + $0x1] ss:$0 sm:$0xff]  ;;  %v1504_v29 = vld [vmem:[#allocation8 + $0x6] ss:$0 sm:$0xff] }
 0x1b0   :  { %v357_v44 = vadd.f32 %v355_v30, %v353_v34  ;;  %754 = vmatpush.msra.mxu2 %v675_v3  ;;  %755 = vmatpush.msra.mxu3 %v675_v3  ;;  %v672_v30 = vld [vmem:[#allocation10 + $0x40] sm:$0xff] }
 0x1b1   :  { %v361_v37 = vpop.permute.xlu0 %360  ;;  %v416_v18 = vadd.f32 %v414_v36, %v404_v48  ;;  %688 = vmatpush.msra.mxu1 %v675_v3 }
 0x1b2   :  { %v365_v38 = vsel %vm157_vm6, %v361_v37, 0.0  ;;  %v393_v40 = vpop.permute.xlu1 %392  ;;  %756 = vmatpush.msra.mxu2 %v674_v2  ;;  %757 = vmatpush.msra.mxu3 %v674_v2 }
 0x1b3   :  { %v367_v46 = vmul.f32 %v1257_v7, %v365_v38  ;;  %v397_v0 = vsel %vm134_vm5, %v393_v40, 0.0  ;;  %689 = vmatpush.msra.mxu1 %v674_v2  ;;  %v671_v38 = vld [vmem:[#allocation10 + $0x38] sm:$0xff] }
 0x1b4   :  { %v399_v47 = vmul.f32 %v1272_v32, %v397_v0  ;;  %v799_v32 = vld [vmem:[%s1594_s3] ss:$0 sm:$0xff]  ;;  %758 = vmatpush.msra.mxu2 %v673_v33  ;;  %759 = vmatpush.msra.mxu3 %v673_v33 }
 0x1b5   :  { %v369_v50 = vadd.f32 %v367_v46, %v357_v44  ;;  %744 = vmatmul.msk.f32.gmra.mxu0 %vm430_vm7, %v416_v18  ;;  %690 = vmatpush.msra.mxu1 %v673_v33  ;;  %v669_v44 = vld [vmem:[#allocation10 + $0x28] sm:$0xff]  ;;  %v668_v0 = vld [vmem:[#allocation10 + $0x20] sm:$0xff]  ;;  %v667_v18 = vld [vmem:[#allocation10 + $0x18] sm:$0xff] }
 0x1b6   :  { %760 = vmatpush.msra.mxu2 %v672_v30  ;;  %761 = vmatpush.msra.mxu3 %v672_v30 }
 0x1b7   :  { %v401_v51 = vadd.f32 %v399_v47, %v369_v50  ;;  %691 = vmatpush.msra.mxu1 %v672_v30  ;;  %v666_v47 = vld [vmem:[#allocation10 + $0x10] sm:$0xff]  ;;  %v665_v50 = vld [vmem:[#allocation10 + $0x8] sm:$0xff]  ;;  %v1512_v30 = vld [vmem:[#allocation8 + $0x8] ss:$0 sm:$0xff] }
 0x1b8   :  { %762 = vmatpush.msra.mxu2 %v671_v38  ;;  %763 = vmatpush.msra.mxu3 %v671_v38 }
 0x1b9   :  { %v405_v53 = vadd.f32 %v403_v11, %v401_v51  ;;  %692 = vmatpush.msra.mxu1 %v671_v38  ;;  %v664_v51 = vld [vmem:[#allocation10] sm:$0xff] }
 0x1ba   :  { %764 = vmatpush.msra.mxu2 %v670_v55  ;;  %765 = vmatpush.msra.mxu3 %v670_v55 }
 0x1bb   :  { %v417_v7 = vadd.f32 %v415_v52, %v405_v53  ;;  %693 = vmatpush.msra.mxu1 %v670_v55  ;;  %v1467_v52 = vld [vmem:[#allocation8 + $0x2] ss:$0 sm:$0xff] }
 0x1bc   :  { %766 = vmatpush.msra.mxu2 %v669_v44  ;;  %767 = vmatpush.msra.mxu3 %v669_v44 }
 0x1bd   :  { %745 = vmatmul.msk.f32.gmra.mxu0 %vm430_vm7, %v417_v7  ;;  %694 = vmatpush.msra.mxu1 %v669_v44 }
 0x1be   :  { %768 = vmatpush.msra.mxu2 %v668_v0  ;;  %769 = vmatpush.msra.mxu3 %v668_v0 }
 0x1bf   :  { %695 = vmatpush.msra.mxu1 %v668_v0 }
 0x1c0   :  { %770 = vmatpush.msra.mxu2 %v667_v18  ;;  %771 = vmatpush.msra.mxu3 %v667_v18 }
 0x1c1   :  { %696 = vmatpush.msra.mxu1 %v667_v18 }
 0x1c2   :  { %772 = vmatpush.msra.mxu2 %v666_v47  ;;  %773 = vmatpush.msra.mxu3 %v666_v47 }
 0x1c3   :  { %697 = vmatpush.msra.mxu1 %v666_v47 }
 0x1c4   :  { %774 = vmatpush.msra.mxu2 %v665_v50  ;;  %775 = vmatpush.msra.mxu3 %v665_v50 }
 0x1c5   :  { %698 = vmatpush.msra.mxu1 %v665_v50 }
 0x1c6   :  { %776 = vmatpush.msra.mxu2 %v664_v51  ;;  %777 = vmatpush.msra.mxu3 %v664_v51 }
 0x1c7   :  { %699 = vmatpush.msra.mxu1 %v664_v51 }
 0x222   :  { %v460_v41 = vpop.f32.mrf.mxu0 }
 0x223   :  { %v461_v54 = vadd.f32 %v799_v32, %v460_v41 }
 0x225   :  { %v1347_v26 = vmax.f32 %v461_v54, 0.0 }
 0x227   :  { %v476_v35 = vrot.slane %v1347_v26, 7  ;;  %v544_v15 = vrot.slane %v1347_v26, 1 }
 0x22a   :  { %v463_v56 = vpop.f32.mrf.mxu0 }
 0x22b   :  { %v464_v31 = vadd.f32 %v799_v32, %v463_v56 }
 0x22d   :  { %v1349_v17 = vmax.f32 %v464_v31, 0.0 }
 0x22f   :  { %534 = vrot.lane.b32.xlu2 %v1349_v17, %s972_s28  ;;  %516 = vrot.lane.b32.xlu0 %v1349_v17, %s964_s10  ;;  %v477_v8 = vrot.slane %v1349_v17, 7  ;;  %v545_v10 = vrot.slane %v1349_v17, 1 }
 0x231   :  { %v479_v57 = vsel %vm114_vm0, %v477_v8, %v476_v35  ;;  %v1367_v61 = vsel %vm114_vm0, %v476_v35, %v477_v8  ;;  %v547_v16 = vsel %vm222_vm2, %v545_v10, %v544_v15  ;;  %v1441_v24 = vsel %vm222_vm2, %v544_v15, %v545_v10 }
 0x232   :  { %v466_v58 = vpop.f32.mrf.mxu0  ;;  %v1361_v60 = vsel %vm117_vm1, %v479_v57, 0.0  ;;  %v1419_v19 = vsel %vm226_vm3, %v547_v16, 0.0  ;;  %v498_v35 = vmul.f32 %v1454_v27, %v1367_v61 }
 0x233   :  { %501 = vrot.lane.b32.xlu1 %v1361_v60, %s972_s28  ;;  %v467_v20 = vadd.f32 %v799_v32, %v466_v58  ;;  %v497_v36 = vmul.f32 %v1454_v27, %v1361_v60 }
 0x235   :  { %v1373_v62 = vmax.f32 %v467_v20, 0.0 }
 0x237   :  { %482 = vrot.lane.b32.xlu2 %v1361_v60, %s964_s10  ;;  %484 = vrot.lane.b32.xlu0 %v1367_v61, %s964_s10  ;;  %v580_v21 = vrot.slane %v1373_v62, 7  ;;  %v634_v43 = vrot.slane %v1373_v62, 1 }
 0x23a   :  { %v469_v12 = vpop.f32.mrf.mxu0 }
 0x23b   :  { %v470_v45 = vadd.f32 %v799_v32, %v469_v12 }
 0x23d   :  { %v1375_v63 = vmax.f32 %v470_v45, 0.0 }
 0x23f   :  { %612 = vrot.lane.b32.xlu1 %v1375_v63, %s964_s10  ;;  %610 = vrot.lane.b32.xlu2 %v1373_v62, %s964_s10  ;;  %v581_v4 = vrot.slane %v1375_v63, 7  ;;  %v635_v5 = vrot.slane %v1375_v63, 1 }
 0x240   :  { %503 = vrot.lane.b32.xlu0 %v1367_v61, %s972_s28 }
 0x241   :  { %v1389_v9 = vsel %vm114_vm0, %v580_v21, %v581_v4  ;;  %v1397_v42 = vsel %vm222_vm2, %v634_v43, %v635_v5  ;;  %v583_v13 = vsel %vm114_vm0, %v581_v4, %v580_v21  ;;  %v637_v22 = vsel %vm222_vm2, %v635_v5, %v634_v43  ;;  %v1486_v4 = vld [vmem:[#allocation8 + $0x3] ss:$0 sm:$0xff]  ;;  %v1489_v21 = vld [vmem:[#allocation8 + $0x5] ss:$0 sm:$0xff]  ;;  %v1492_v43 = vld [vmem:[#allocation8 + $0x4] ss:$0 sm:$0xff] }
 0x242   :  { %v1409_v14 = vsel %vm117_vm1, %v583_v13, 0.0  ;;  %v1435_v23 = vsel %vm226_vm3, %v637_v22, 0.0  ;;  %v529_v15 = vmul.f32 %v1492_v43, %v1349_v17  ;;  %v597_v17 = vmul.f32 %v1454_v27, %v1389_v9 }
 0x247   :  { %588 = vrot.lane.b32.xlu1 %v1389_v9, %s964_s10  ;;  %624 = vrot.lane.b32.xlu2 %v1373_v62, %s972_s28 }
 0x248   :  { %654 = vrot.lane.b32.xlu0 %v1397_v42, %s972_s28 }
 0x24f   :  { %602 = vrot.lane.b32.xlu1 %v1389_v9, %s972_s28  ;;  %640 = vrot.lane.b32.xlu2 %v1397_v42, %s964_s10 }
 0x250   :  { %586 = vrot.lane.b32.xlu0 %v1409_v14, %s964_s10 }
 0x257   :  { %600 = vrot.lane.b32.xlu1 %v1409_v14, %s972_s28  ;;  %552 = vrot.lane.b32.xlu2 %v1419_v19, %s964_s10 }
 0x258   :  { %626 = vrot.lane.b32.xlu0 %v1375_v63, %s972_s28 }
 0x25f   :  { %514 = vrot.lane.b32.xlu1 %v1347_v26, %s964_s10  ;;  %570 = vrot.lane.b32.xlu2 %v1419_v19, %s972_s28 }
 0x260   :  { %642 = vrot.lane.b32.xlu0 %v1435_v23, %s964_s10 }
 0x267   :  { %532 = vrot.lane.b32.xlu1 %v1347_v26, %s972_s28  ;;  %568 = vrot.lane.b32.xlu2 %v1441_v24, %s972_s28 }
 0x268   :  { %656 = vrot.lane.b32.xlu0 %v1435_v23, %s972_s28 }
 0x26f   :  { %550 = vrot.lane.b32.xlu1 %v1441_v24, %s964_s10 }
 0x289   :  { %v1451_v28 = vpop.permute.xlu2 %534 }
 0x28a   :  { %v537_v10 = vsel %vm505_vm9, %v1451_v28, 0.0 }
 0x28b   :  { %v541_v1 = vmul.f32 %v1489_v21, %v537_v10 }
 0x291   :  { %v483_v48 = vpop.permute.xlu2 %482 }
 0x292   :  { %v487_v34 = vsel %vm486_vm8, %v483_v48, 0.0 }
 0x293   :  { %v491_v37 = vmul.f32 %v1456_v25, %v487_v34 }
 0x295   :  { %v499_v40 = vadd.f32 %v497_v36, %v491_v37 }
 0x299   :  { %v1463_v46 = vpop.permute.xlu2 %610 }
 0x2a1   :  { %v517_v11 = vpop.permute.xlu0 %516  ;;  %v1465_v59 = vpop.permute.xlu2 %624 }
 0x2a2   :  { %v519_v12 = vsel %vm486_vm8, %v517_v11, 0.0 }
 0x2a3   :  { %v523_v61 = vmul.f32 %v1486_v4, %v519_v12 }
 0x2a5   :  { %v502_v53 = vpop.permute.xlu1 %501 }
 0x2a6   :  { %v506_v7 = vsel %vm505_vm9, %v502_v53, 0.0 }
 0x2a7   :  { %v510_v41 = vmul.f32 %v1467_v52, %v506_v7 }
 0x2a9   :  { %v1473_v32 = vadd.f32 %v510_v41, %v499_v40  ;;  %v1475_v54 = vpop.permute.xlu2 %640  ;;  %v485_v56 = vpop.permute.xlu0 %484  ;;  %v565_v40 = vmul.f32 %v1501_v49, %v1419_v19  ;;  %v596_v19 = vmul.f32 %v1454_v27, %v1409_v14 }
 0x2aa   :  { %v488_v31 = vsel %vm486_vm8, %v485_v56, 0.0 }
 0x2ab   :  { %v492_v8 = vmul.f32 %v1456_v25, %v488_v31 }
 0x2ad   :  { %v500_v57 = vadd.f32 %v498_v35, %v492_v8  ;;  %v621_v8 = vmul.f32 %v1492_v43, %v1375_v63 }
 0x2b1   :  { %v613_v58 = vpop.permute.xlu1 %612  ;;  %v553_v60 = vpop.permute.xlu2 %552 }
 0x2b2   :  { %v504_v20 = vpop.permute.xlu0 %503  ;;  %v555_v22 = vsel %vm486_vm8, %v553_v60, 0.0  ;;  %v615_v9 = vsel %vm486_vm8, %v613_v58, 0.0  ;;  %v614_v60 = vsel %vm486_vm8, %v1463_v46, 0.0  ;;  %v620_v46 = vmul.f32 %v1492_v43, %v1373_v62 }
 0x2b3   :  { %v507_v45 = vsel %vm505_vm9, %v504_v20, 0.0  ;;  %v559_v34 = vmul.f32 %v1504_v29, %v555_v22  ;;  %v617_v41 = vmul.f32 %v1486_v4, %v615_v9 }
 0x2b4   :  { %v511_v5 = vmul.f32 %v1467_v52, %v507_v45  ;;  %v616_v45 = vmul.f32 %v1486_v4, %v614_v60 }
 0x2b6   :  { %v513_v13 = vadd.f32 %v511_v5, %v500_v57  ;;  %v628_v5 = vsel %vm505_vm9, %v1465_v59, 0.0 }
 0x2b7   :  { %v630_v10 = vmul.f32 %v1489_v21, %v628_v5 }
 0x2b8   :  { %v525_v16 = vadd.f32 %v523_v61, %v513_v13 }
 0x2b9   :  { %v589_v6 = vpop.permute.xlu1 %588  ;;  %v571_v33 = vpop.permute.xlu2 %570 }
 0x2ba   :  { %v531_v3 = vadd.f32 %v529_v15, %v525_v16  ;;  %v591_v2 = vsel %vm486_vm8, %v589_v6, 0.0  ;;  %v655_v28 = vpop.permute.xlu0 %654  ;;  %v573_v38 = vsel %vm505_vm9, %v571_v33, 0.0  ;;  %v650_v33 = vmul.f32 %v1501_v49, %v1397_v42 }
 0x2bb   :  { %v593_v48 = vmul.f32 %v1456_v25, %v591_v2  ;;  %v577_v44 = vmul.f32 %v1512_v30, %v573_v38  ;;  %v658_v2 = vsel %vm505_vm9, %v655_v28, 0.0 }
 0x2bc   :  { %v543_v36 = vadd.f32 %v541_v1, %v531_v3 }
 0x2bd   :  { %v599_v37 = vadd.f32 %v597_v17, %v593_v48  ;;  %v528_v48 = vmul.f32 %v1492_v43, %v1347_v26 }
 0x2be   :  { %v561_v55 = vadd.f32 %v559_v34, %v543_v36 }
 0x2c0   :  { %v567_v0 = vadd.f32 %v565_v40, %v561_v55 }
 0x2c1   :  { %v603_v18 = vpop.permute.xlu1 %602  ;;  %v569_v9 = vpop.permute.xlu2 %568 }
 0x2c2   :  { %v605_v47 = vsel %vm505_vm9, %v603_v18, 0.0  ;;  %v587_v50 = vpop.permute.xlu0 %586  ;;  %v579_v11 = vadd.f32 %v577_v44, %v567_v0 }
 0x2c3   :  { %v607_v51 = vmul.f32 %v1467_v52, %v605_v47  ;;  %v590_v53 = vsel %vm486_vm8, %v587_v50, 0.0 }
 0x2c4   :  { %v592_v7 = vmul.f32 %v1456_v25, %v590_v53  ;;  %703 = vmatmul.f32.vlgmr.msra.gmra.mxu2 %v579_v11 }
 0x2c5   :  { %v609_v56 = vadd.f32 %v607_v51, %v599_v37  ;;  %v660_v37 = vmul.f32 %v1512_v30, %v658_v2  ;;  %v572_v51 = vsel %vm505_vm9, %v569_v9, 0.0 }
 0x2c6   :  { %v598_v31 = vadd.f32 %v596_v19, %v592_v7  ;;  %v576_v19 = vmul.f32 %v1512_v30, %v572_v51 }
 0x2c7   :  { %v619_v35 = vadd.f32 %v617_v41, %v609_v56  ;;  %v809_v56 = vld [vmem:[%s1597_s6] ss:$0 sm:$0xff] }
 0x2c9   :  { %v601_v57 = vpop.permute.xlu1 %600  ;;  %v623_v58 = vadd.f32 %v621_v8, %v619_v35 }
 0x2ca   :  { %v604_v14 = vsel %vm505_vm9, %v601_v57, 0.0  ;;  %v627_v27 = vpop.permute.xlu0 %626 }
 0x2cb   :  { %v606_v25 = vmul.f32 %v1467_v52, %v604_v14  ;;  %v629_v20 = vsel %vm505_vm9, %v627_v27, 0.0  ;;  %v644_v52 = vsel %vm486_vm8, %v1475_v54, 0.0 }
 0x2cc   :  { %v631_v12 = vmul.f32 %v1489_v21, %v629_v20  ;;  %v646_v1 = vmul.f32 %v1504_v29, %v644_v52 }
 0x2cd   :  { %v608_v63 = vadd.f32 %v606_v25, %v598_v31 }
 0x2ce   :  { %v633_v61 = vadd.f32 %v631_v12, %v623_v58 }
 0x2cf   :  { %v618_v13 = vadd.f32 %v616_v45, %v608_v63 }
 0x2d1   :  { %v622_v15 = vadd.f32 %v620_v46, %v618_v13  ;;  %v515_v16 = vpop.permute.xlu1 %514 }
 0x2d2   :  { %v518_v22 = vsel %vm486_vm8, %v515_v16, 0.0  ;;  %v643_v6 = vpop.permute.xlu0 %642 }
 0x2d3   :  { %v522_v59 = vmul.f32 %v1486_v4, %v518_v22  ;;  %v645_v62 = vsel %vm486_vm8, %v643_v6, 0.0  ;;  %v632_v3 = vadd.f32 %v630_v10, %v622_v15  ;;  %v651_v4 = vmul.f32 %v1501_v49, %v1435_v23 }
 0x2d4   :  { %v647_v54 = vmul.f32 %v1504_v29, %v645_v62 }
 0x2d5   :  { %v524_v17 = vadd.f32 %v522_v59, %v1473_v32  ;;  %v648_v34 = vadd.f32 %v646_v1, %v632_v3 }
 0x2d6   :  { %v649_v36 = vadd.f32 %v647_v54, %v633_v61 }
 0x2d7   :  { %v530_v38 = vadd.f32 %v528_v48, %v524_v17  ;;  %v652_v40 = vadd.f32 %v650_v33, %v648_v34 }
 0x2d8   :  { %v653_v28 = vadd.f32 %v651_v4, %v649_v36 }
 0x2d9   :  { %v533_v55 = vpop.permute.xlu1 %532  ;;  %v662_v44 = vadd.f32 %v660_v37, %v652_v40 }
 0x2da   :  { %v536_v42 = vsel %vm505_vm9, %v533_v55, 0.0  ;;  %v657_v0 = vpop.permute.xlu0 %656 }
 0x2db   :  { %v540_v32 = vmul.f32 %v1489_v21, %v536_v42  ;;  %v659_v26 = vsel %vm505_vm9, %v657_v0, 0.0  ;;  %706 = vmatmul.f32.vlgmr.msra.gmra.mxu3 %v662_v44  ;;  %v564_v21 = vmul.f32 %v1501_v49, %v1441_v24 }
 0x2dc   :  { %v661_v23 = vmul.f32 %v1512_v30, %v659_v26 }
 0x2dd   :  { %v542_v43 = vadd.f32 %v540_v32, %v530_v38 }
 0x2de   :  { %v663_v18 = vadd.f32 %v661_v23, %v653_v28 }
 0x2e1   :  { %v551_v47 = vpop.permute.xlu1 %550 }
 0x2e2   :  { %v554_v50 = vsel %vm486_vm8, %v551_v47, 0.0 }
 0x2e3   :  { %v558_v11 = vmul.f32 %v1504_v29, %v554_v50  ;;  %709 = vmatmul.f32.gmra.mxu3 %v663_v18 }
 0x2e5   :  { %v560_v53 = vadd.f32 %v558_v11, %v542_v43 }
 0x2e7   :  { %v566_v7 = vadd.f32 %v564_v21, %v560_v53 }
 0x2e9   :  { %v578_v41 = vadd.f32 %v576_v19, %v566_v7 }
 0x2eb   :  { %700 = vmatmul.f32.vlgmr.msra.gmra.mxu1 %v578_v41 }
 0x347   :  { %v704_v31 = vpop.f32.mrf.mxu2 }
 0x348   :  { %v705_v35 = vadd.f32 %v809_v56, %v704_v31 }
 0x34a   :  { %v714_v29 = vmax.f32 %v705_v35, 0.0 }
 0x34c   :  { %718 = vst [vmem:[#allocation11 + $0x8] sm:$0xff] %v714_v29 }
 0x35e   :  { %v707_v8 = vpop.f32.mrf.mxu3 }
 0x35f   :  { %v708_v39 = vadd.f32 %v809_v56, %v707_v8 }
 0x361   :  { %v715_v57 = vmax.f32 %v708_v39, 0.0 }
 0x363   :  { %719 = vst [vmem:[#allocation11 + $0x10] sm:$0xff] %v715_v57 }
 0x366   :  { %v710_v58 = vpop.f32.mrf.mxu3 }
 0x367   :  { %v711_v24 = vadd.f32 %v809_v56, %v710_v58 }
 0x368   :  { %v701_v49 = vpop.f32.mrf.mxu1 }
 0x369   :  { %v716_v30 = vmax.f32 %v711_v24, 0.0  ;;  %v702_v60 = vadd.f32 %v809_v56, %v701_v49 }
 0x36b   :  { %720 = vst [vmem:[#allocation11 + $0x18] sm:$0xff] %v716_v30  ;;  %v713_v14 = vmax.f32 %v702_v60, 0.0 }
 0x36d   :  { %717 = vst [vmem:[#allocation11] sm:$0xff] %v713_v14 }
 0x36e   :  { %733 = dma.vmem_to_hbm [thread:$0]  %s726_s8, 512, %s728_s13, [#allocation4], %s963_s9, %s963_s9, %s964_s10  }
 0x36f   :  { %960 = dma.done.wait [#allocation4], 512  }
 0x370   :  { %961 = vsyncadd [#allocation4], 4294966784 }
 0x371   :  { %738 = vsyncpa [#allocation3], 1 }
 0x372   :  { %739 = vsyncpa [#allocation6], 1 }
 0x373   :  { %740 = vsyncpa [#allocation9], 1 }
 0x374   :  { %741 = vsyncpa [#allocation4], 1 }

</bundles_post_ra>
